<compile_context>
chip_gen: v5e
topology: v5e:2x2
jax: 0.10.0
libtpu: 0.0.40
codegen_flags: <defaults>
</compile_context>

<pallas_src>
import functools

import jax
import jax.numpy as jnp
from jax.experimental import pallas as pl
from jax.experimental.pallas import tpu as pltpu


def _round_up(x, m):
    return (x + m - 1) // m * m


def _pick_tm(m, tm_max):
    """Row tile: <= tm_max, multiple of 8, and small enough that the batch grid
    has >= 4 steps when the batch allows it (>= 2 steps/TensorCore on v7x)."""
    tm = min(max(tm_max, 8), _round_up(m, 8))
    if m >= 32:
        tm = min(tm, max(8, _round_up(-(-m // 4), 8)))
    return tm


# ---------------------------------------------------------------------------
# Fused whole-MLP Pallas kernel
# ---------------------------------------------------------------------------
def _make_fused_mlp_kernel(layer_meta):
    """layer_meta: tuple of (has_skip, apply_relu) per layer.

    Ref order: feat, then per layer [w, (w_skip), b], then out.
    All matmuls run on the MXU with f32 accumulation; bias + ReLU on the f32
    accumulator; intermediate activations never leave VMEM.
    """
    def kernel(*refs):
        x = refs[0][...]                      # (tm, k0_pad) padded features
        o_ref = refs[-1]
        h = x
        idx = 1
        for has_skip, apply_relu in layer_meta:
            w = refs[idx][...]; idx += 1
            w_skip = None
            if has_skip:
                w_skip = refs[idx][...]; idx += 1
            b = refs[idx][...]; idx += 1
            h_in = h.astype(w.dtype) if h.dtype != w.dtype else h
            acc = jnp.dot(h_in, w, preferred_element_type=jnp.float32)
            if has_skip:
                x_in = x.astype(w_skip.dtype) if x.dtype != w_skip.dtype else x
                acc = acc + jnp.dot(x_in, w_skip,
                                    preferred_element_type=jnp.float32)
            acc = acc + b                     # (tm, n) + (1, n) broadcast
            if apply_relu:
                acc = jnp.maximum(acc, 0.0)
            h = acc                           # stays resident; no HBM round-trip
        o_ref[...] = h.astype(o_ref.dtype)
    return kernel


def geometry_net_fused(prepared, feat_embedded, *, tm=256,
                       vmem_limit_bytes=32 * 1024 * 1024):
    """One pallas_call for the whole MLP.  prepared = prepare_params(...)."""
    m, k0 = feat_embedded.shape
    k0_pad = prepared[0]["w"].shape[0]
    n_out_pad = prepared[-1]["w"].shape[1]
    n_layers = len(prepared)

    tm_eff = _pick_tm(m, tm)
    m_pad = _round_up(m, tm_eff)

    xp = jnp.pad(feat_embedded.astype(jnp.float32),
                 ((0, m_pad - m), (0, k0_pad - k0)))

    operands = [xp]
    in_specs = [pl.BlockSpec((tm_eff, k0_pad), lambda i: (i, 0))]
    layer_meta = []
    flops = 0
    bytes_accessed = xp.size * xp.dtype.itemsize + m_pad * n_out_pad * 4
    for l, entry in enumerate(prepared):
        has_skip = "w_skip" in entry
        names = ("w", "w_skip", "b") if has_skip else ("w", "b")
        for name in names:
            arr = entry[name]
            operands.append(arr)
            # Constant block index -> weight/bias DMA'd once, stays in VMEM.
            in_specs.append(pl.BlockSpec(arr.shape, lambda i: (0, 0)))
            bytes_accessed += arr.size * arr.dtype.itemsize
            if name != "b":
                flops += 2 * m_pad * arr.shape[0] * arr.shape[1]
        layer_meta.append((has_skip, l != n_layers - 1))

    kernel = _make_fused_mlp_kernel(tuple(layer_meta))

    return pl.pallas_call(
        kernel,
        out_shape=jax.ShapeDtypeStruct((m_pad, n_out_pad), jnp.float32),
        grid_spec=pltpu.PrefetchScalarGridSpec(
            num_scalar_prefetch=0,
            grid=(m_pad // tm_eff,),
            in_specs=in_specs,
            out_specs=pl.BlockSpec((tm_eff, n_out_pad), lambda i: (i, 0)),
        ),
        compiler_params=pltpu.CompilerParams(
            dimension_semantics=("parallel",),
            vmem_limit_bytes=vmem_limit_bytes,
        ),
        cost_estimate=pl.CostEstimate(flops=flops, transcendentals=0,
                                      bytes_accessed=bytes_accessed),
    )(*operands)


# ---------------------------------------------------------------------------
# GeometryNet glue (embedder, params, param prep, forward)
# ---------------------------------------------------------------------------
def embed(x, n_freq):
    """get_embedder equivalent: identity for n_freq == 0, NeRF sin/cos PE otherwise."""
    if n_freq <= 0:
        return x
    # TODO(synk): get_embedder is not provided by the spec; this is the standard
    # NeRF [x, sin(2^k x), cos(2^k x)] encoding (input_ch = d * (2*n_freq + 1)).
    parts = [x]
    for k in range(n_freq):
        f = float(2 ** k)
        parts.append(jnp.sin(f * x))
        parts.append(jnp.cos(f * x))
    return jnp.concatenate(parts, axis=-1)


def init_geometry_net(key, *, d_in_1, d_in_2, d_hidden, n_layers, skip_in,
                      multires=0, use_topo=True, concat_qp=False):
    input_feat_dim = (d_in_1 + d_in_2) if use_topo else d_in_1
    base_dim = input_feat_dim + (3 if concat_qp else 0)
    input_ch = base_dim * (2 * multires + 1) if multires > 0 else base_dim

    D, W = n_layers, d_hidden
    params = []
    keys = jax.random.split(key, D + 1)
    for l in range(D + 1):
        out_dim = 1 if l == D else W
        if l == 0:
            in_dim = input_ch
        elif l in skip_in:
            in_dim = input_ch + W
        else:
            in_dim = W
        kw, kb = jax.random.split(keys[l])
        bound = 1.0 / (in_dim ** 0.5)            # PyTorch nn.Linear default init
        w = jax.random.uniform(kw, (in_dim, out_dim), jnp.float32, -bound, bound)
        b = jax.random.uniform(kb, (out_dim,), jnp.float32, -bound, bound)
        if l == D:
            # nn.utils.weight_norm(dim=0): per-output-unit norm.  In [in, out]
            # layout that is a per-column norm; PyTorch initializes g = ||v||.
            g = jnp.linalg.norm(w, axis=0)
            params.append({"kind": "wn_linear", "v": w, "g": g, "b": b})
        else:
            params.append({"kind": "dense_relu", "w": w, "b": b})
    return params, input_ch


def _effective_weight(p):
    if p["kind"] == "wn_linear":
        v = p["v"]
        return p["g"] * v / jnp.linalg.norm(v, axis=0, keepdims=True)
    return p["w"]


def prepare_params(params, *, input_ch, skips, mxu_input_dtype=None):
    """Pad / weight-norm / (optionally) cast all layer params ONCE.

    Weights are [in_dim, out_dim] so each layer is h @ W + b.  Skip layers are
    split into W_h (rows multiplying the running hidden state) and W_skip (rows
    multiplying the embedded input), which replaces torch.cat([h, feat], -1).
    When mxu_input_dtype is set, only hidden layers (1..D-1) are cast; layer 0
    and the final weight-normed layer keep f32 MXU operands.
    """
    assert 0 not in skips, "skip at layer 0 is not meaningful in GeometryNet"
    D = len(params) - 1
    prepared = []
    for l, p in enumerate(params):
        w = _effective_weight(p)                       # [in_dim, out_dim] f32
        b = p["b"]
        in_dim, out_dim = w.shape
        n_pad = _round_up(max(out_dim, 128), 128)
        dt = (mxu_input_dtype
              if (mxu_input_dtype is not None and 0 < l < D) else jnp.float32)
        entry = {"b": jnp.pad(b, (0, n_pad - out_dim))
                        .astype(jnp.float32).reshape(1, n_pad)}
        if l in skips:
            w_rows_h = in_dim - input_ch               # rows that multiply h
            kh_pad = _round_up(max(w_rows_h, 128), 128)
            ks_pad = _round_up(max(input_ch, 128), 128)
            entry["w"] = jnp.pad(
                w[:w_rows_h],
                ((0, kh_pad - w_rows_h), (0, n_pad - out_dim))).astype(dt)
            entry["w_skip"] = jnp.pad(
                w[w_rows_h:],
                ((0, ks_pad - input_ch), (0, n_pad - out_dim))).astype(dt)
        else:
            k_pad = _round_up(max(in_dim, 128), 128)
            entry["w"] = jnp.pad(
                w, ((0, k_pad - in_dim), (0, n_pad - out_dim))).astype(dt)
        prepared.append(entry)
    return prepared


@functools.partial(jax.jit, static_argnames=("multires", "tm"))
def geometry_net_forward(prepared, feat, *, multires=0, tm=256):
    """Pallas-backed GeometryNet.forward: embed -> fused MLP -> un-pad slice,
    all inside one jit (single fused pallas_call per forward)."""
    feat_input = embed(feat, multires)
    out = geometry_net_fused(prepared, feat_input, tm=tm)
    return out[:feat.shape[0], :1]        # d_out == 1; un-pad inside the jit


def geometry_net_ref(params, feat, *, skips, multires):
    """Pure-jnp reference (concat-based, like the PyTorch module)."""
    feat_input = embed(feat, multires)
    h = feat_input
    D = len(params) - 1
    for i, p in enumerate(params):
        if i in skips:
            h = jnp.concatenate([h, feat_input], axis=-1)
        w = _effective_weight(p)
        h = jnp.dot(h, w, precision=jax.lax.Precision.HIGHEST) + p["b"]
        if i != D:
            h = jnp.maximum(h, 0.0)
    return h


if __name__ == "__main__":
    key = jax.random.PRNGKey(0)
    k_params, k_feat = jax.random.split(key)

    # GeometryNet config: 3 + 6 input features, hidden width 256 (lane-aligned),
    # 4 DenseLayers + final weight-normed Linear, skip at layer 2, multires=0.
    d_in_1, d_in_2 = 3, 6
    d_hidden, n_layers = 256, 4
    skip_in = (2,)
    multires = 0
    batch = 512          # -> 4 row tiles of 128 (>= 2 tiles per TC on v7x)

    params, input_ch = init_geometry_net(
        k_params, d_in_1=d_in_1, d_in_2=d_in_2, d_hidden=d_hidden,
        n_layers=n_layers, skip_in=skip_in, multires=multires, use_topo=True)
    feat = jax.random.normal(k_feat, (batch, d_in_1 + d_in_2), dtype=jnp.float32)

    ref = geometry_net_ref(params, feat, skips=skip_in, multires=multires)

    # f32 MXU-operand path.
    prepared = prepare_params(params, input_ch=input_ch, skips=skip_in)
    out = geometry_net_forward(prepared, feat, multires=multires)
    out = jax.block_until_ready(out)
    assert out.shape == (batch, 1), out.shape
    err = float(jnp.max(jnp.abs(out - ref)))
    assert jnp.allclose(out, ref, atol=1e-3, rtol=1e-3), f"f32 max abs err {err}"

    # bf16 MXU operands for hidden layers (v6e/v7x recommendation); f32
    # accumulation everywhere, f32 operands for layer 0 and the final layer.
    prepared_bf16 = prepare_params(params, input_ch=input_ch, skips=skip_in,
                                   mxu_input_dtype=jnp.bfloat16)
    out_bf16 = geometry_net_forward(prepared_bf16, feat, multires=multires)
    out_bf16 = jax.block_until_ready(out_bf16)
    err_bf16 = float(jnp.max(jnp.abs(out_bf16 - ref)))
    assert jnp.allclose(out_bf16, ref, atol=1e-1, rtol=1e-1), \
        f"bf16 max abs err {err_bf16}"

    print("KERNEL_OK")
</pallas_src>

<mosaic_0001>
module attributes {stable_mosaic.version = 11 : i64} {
  func.func @kernel(%arg0: i32, %arg1: memref<128x128xf32, #tpu.memory_space<vmem>>, %arg2: memref<128x256xf32, #tpu.memory_space<vmem>>, %arg3: memref<1x256xf32, #tpu.memory_space<vmem>>, %arg4: memref<256x256xf32, #tpu.memory_space<vmem>>, %arg5: memref<1x256xf32, #tpu.memory_space<vmem>>, %arg6: memref<256x256xf32, #tpu.memory_space<vmem>>, %arg7: memref<128x256xf32, #tpu.memory_space<vmem>>, %arg8: memref<1x256xf32, #tpu.memory_space<vmem>>, %arg9: memref<256x256xf32, #tpu.memory_space<vmem>>, %arg10: memref<1x256xf32, #tpu.memory_space<vmem>>, %arg11: memref<256x128xf32, #tpu.memory_space<vmem>>, %arg12: memref<1x128xf32, #tpu.memory_space<vmem>>, %arg13: memref<128x128xf32, #tpu.memory_space<vmem>>) attributes {dimension_semantics = [#tpu.dimension_semantics<parallel>], iteration_bounds = array<i64: 4>, scalar_prefetch = 0 : i64, scratch_operands = 0 : i64, tpu.core_type = #tpu.core_type<tc>, window_params = [{transform_indices = @transform_0, window_bounds = array<i64: 128, 128>}, {pipeline_mode = #tpu.pipeline_mode<synchronous>, transform_indices = @transform_1, window_bounds = array<i64: 128, 256>}, {pipeline_mode = #tpu.pipeline_mode<synchronous>, transform_indices = @transform_2, window_bounds = array<i64: 1, 256>}, {pipeline_mode = #tpu.pipeline_mode<synchronous>, transform_indices = @transform_3, window_bounds = array<i64: 256, 256>}, {pipeline_mode = #tpu.pipeline_mode<synchronous>, transform_indices = @transform_4, window_bounds = array<i64: 1, 256>}, {pipeline_mode = #tpu.pipeline_mode<synchronous>, transform_indices = @transform_5, window_bounds = array<i64: 256, 256>}, {pipeline_mode = #tpu.pipeline_mode<synchronous>, transform_indices = @transform_6, window_bounds = array<i64: 128, 256>}, {pipeline_mode = #tpu.pipeline_mode<synchronous>, transform_indices = @transform_7, window_bounds = array<i64: 1, 256>}, {pipeline_mode = #tpu.pipeline_mode<synchronous>, transform_indices = @transform_8, window_bounds = array<i64: 256, 256>}, {pipeline_mode = #tpu.pipeline_mode<synchronous>, transform_indices = @transform_9, window_bounds = array<i64: 1, 256>}, {pipeline_mode = #tpu.pipeline_mode<synchronous>, transform_indices = @transform_10, window_bounds = array<i64: 256, 128>}, {pipeline_mode = #tpu.pipeline_mode<synchronous>, transform_indices = @transform_11, window_bounds = array<i64: 1, 128>}, {transform_indices = @transform_12, window_bounds = array<i64: 128, 128>}]} {
    %c0 = arith.constant 0 : index
    %c0_0 = arith.constant 0 : index
    %0 = vector.load %arg1[%c0, %c0_0] : memref<128x128xf32, #tpu.memory_space<vmem>>, vector<128x128xf32>
    %c0_1 = arith.constant 0 : index
    %c0_2 = arith.constant 0 : index
    %1 = vector.load %arg2[%c0_1, %c0_2] : memref<128x256xf32, #tpu.memory_space<vmem>>, vector<128x256xf32>
    %c0_3 = arith.constant 0 : index
    %c0_4 = arith.constant 0 : index
    %2 = vector.load %arg3[%c0_3, %c0_4] : memref<1x256xf32, #tpu.memory_space<vmem>>, vector<1x256xf32>
    %cst = arith.constant dense<0.000000e+00> : vector<128x256xf32>
    %3 = tpu.matmul %0, %1, %cst {dimension_numbers = #tpu.dot_dimension_numbers<[1], [0], [0], [1], [0, 0, 1, 1], [], []>} : vector<128x128xf32>, vector<128x256xf32>, vector<128x256xf32> -> vector<128x256xf32>
    %4 = vector.broadcast %2 : vector<1x256xf32> to vector<128x256xf32>
    %5 = arith.addf %3, %4 : vector<128x256xf32>
    %cst_5 = arith.constant 0.000000e+00 : f32
    %6 = vector.broadcast %cst_5 : f32 to vector<128x256xf32>
    %7 = arith.maximumf %5, %6 : vector<128x256xf32>
    %c0_6 = arith.constant 0 : index
    %c0_7 = arith.constant 0 : index
    %8 = vector.load %arg4[%c0_6, %c0_7] : memref<256x256xf32, #tpu.memory_space<vmem>>, vector<256x256xf32>
    %c0_8 = arith.constant 0 : index
    %c0_9 = arith.constant 0 : index
    %9 = vector.load %arg5[%c0_8, %c0_9] : memref<1x256xf32, #tpu.memory_space<vmem>>, vector<1x256xf32>
    %cst_10 = arith.constant dense<0.000000e+00> : vector<128x256xf32>
    %10 = tpu.matmul %7, %8, %cst_10 {dimension_numbers = #tpu.dot_dimension_numbers<[1], [0], [0], [1], [0, 0, 1, 1], [], []>} : vector<128x256xf32>, vector<256x256xf32>, vector<128x256xf32> -> vector<128x256xf32>
    %11 = vector.broadcast %9 : vector<1x256xf32> to vector<128x256xf32>
    %12 = arith.addf %10, %11 : vector<128x256xf32>
    %cst_11 = arith.constant 0.000000e+00 : f32
    %13 = vector.broadcast %cst_11 : f32 to vector<128x256xf32>
    %14 = arith.maximumf %12, %13 : vector<128x256xf32>
    %c0_12 = arith.constant 0 : index
    %c0_13 = arith.constant 0 : index
    %15 = vector.load %arg6[%c0_12, %c0_13] : memref<256x256xf32, #tpu.memory_space<vmem>>, vector<256x256xf32>
    %c0_14 = arith.constant 0 : index
    %c0_15 = arith.constant 0 : index
    %16 = vector.load %arg7[%c0_14, %c0_15] : memref<128x256xf32, #tpu.memory_space<vmem>>, vector<128x256xf32>
    %c0_16 = arith.constant 0 : index
    %c0_17 = arith.constant 0 : index
    %17 = vector.load %arg8[%c0_16, %c0_17] : memref<1x256xf32, #tpu.memory_space<vmem>>, vector<1x256xf32>
    %cst_18 = arith.constant dense<0.000000e+00> : vector<128x256xf32>
    %18 = tpu.matmul %14, %15, %cst_18 {dimension_numbers = #tpu.dot_dimension_numbers<[1], [0], [0], [1], [0, 0, 1, 1], [], []>} : vector<128x256xf32>, vector<256x256xf32>, vector<128x256xf32> -> vector<128x256xf32>
    %cst_19 = arith.constant dense<0.000000e+00> : vector<128x256xf32>
    %19 = tpu.matmul %0, %16, %cst_19 {dimension_numbers = #tpu.dot_dimension_numbers<[1], [0], [0], [1], [0, 0, 1, 1], [], []>} : vector<128x128xf32>, vector<128x256xf32>, vector<128x256xf32> -> vector<128x256xf32>
    %20 = arith.addf %18, %19 : vector<128x256xf32>
    %21 = vector.broadcast %17 : vector<1x256xf32> to vector<128x256xf32>
    %22 = arith.addf %20, %21 : vector<128x256xf32>
    %cst_20 = arith.constant 0.000000e+00 : f32
    %23 = vector.broadcast %cst_20 : f32 to vector<128x256xf32>
    %24 = arith.maximumf %22, %23 : vector<128x256xf32>
    %c0_21 = arith.constant 0 : index
    %c0_22 = arith.constant 0 : index
    %25 = vector.load %arg9[%c0_21, %c0_22] : memref<256x256xf32, #tpu.memory_space<vmem>>, vector<256x256xf32>
    %c0_23 = arith.constant 0 : index
    %c0_24 = arith.constant 0 : index
    %26 = vector.load %arg10[%c0_23, %c0_24] : memref<1x256xf32, #tpu.memory_space<vmem>>, vector<1x256xf32>
    %cst_25 = arith.constant dense<0.000000e+00> : vector<128x256xf32>
    %27 = tpu.matmul %24, %25, %cst_25 {dimension_numbers = #tpu.dot_dimension_numbers<[1], [0], [0], [1], [0, 0, 1, 1], [], []>} : vector<128x256xf32>, vector<256x256xf32>, vector<128x256xf32> -> vector<128x256xf32>
    %28 = vector.broadcast %26 : vector<1x256xf32> to vector<128x256xf32>
    %29 = arith.addf %27, %28 : vector<128x256xf32>
    %cst_26 = arith.constant 0.000000e+00 : f32
    %30 = vector.broadcast %cst_26 : f32 to vector<128x256xf32>
    %31 = arith.maximumf %29, %30 : vector<128x256xf32>
    %c0_27 = arith.constant 0 : index
    %c0_28 = arith.constant 0 : index
    %32 = vector.load %arg11[%c0_27, %c0_28] : memref<256x128xf32, #tpu.memory_space<vmem>>, vector<256x128xf32>
    %c0_29 = arith.constant 0 : index
    %c0_30 = arith.constant 0 : index
    %33 = vector.load %arg12[%c0_29, %c0_30] : memref<1x128xf32, #tpu.memory_space<vmem>>, vector<1x128xf32>
    %cst_31 = arith.constant dense<0.000000e+00> : vector<128x128xf32>
    %34 = tpu.matmul %31, %32, %cst_31 {dimension_numbers = #tpu.dot_dimension_numbers<[1], [0], [0], [1], [0, 0, 1, 1], [], []>} : vector<128x256xf32>, vector<256x128xf32>, vector<128x128xf32> -> vector<128x128xf32>
    %35 = vector.broadcast %33 : vector<1x128xf32> to vector<128x128xf32>
    %36 = arith.addf %34, %35 : vector<128x128xf32>
    %c0_32 = arith.constant 0 : index
    %c0_33 = arith.constant 0 : index
    %37 = vector.load %arg13[%c0_32, %c0_33] : memref<128x128xf32, #tpu.memory_space<vmem>>, vector<128x128xf32>
    tpu.vector_store %arg13[%c0_32, %c0_33], %36 {strides = array<i32>} : memref<128x128xf32, #tpu.memory_space<vmem>>, vector<128x128xf32>,
    return
  }
  func.func @transform_0(%arg0: i32) -> (i32, i32) {
    %c0_i32 = arith.constant 0 : i32
    %c0_i32_0 = arith.constant 0 : i32
    return %arg0, %c0_i32 : i32, i32
  }
  func.func @transform_1(%arg0: i32) -> (i32, i32) {
    %c0_i32 = arith.constant 0 : i32
    %c0_i32_0 = arith.constant 0 : i32
    %c0_i32_1 = arith.constant 0 : i32
    return %c0_i32, %c0_i32_0 : i32, i32
  }
  func.func @transform_2(%arg0: i32) -> (i32, i32) {
    %c0_i32 = arith.constant 0 : i32
    %c0_i32_0 = arith.constant 0 : i32
    %c0_i32_1 = arith.constant 0 : i32
    return %c0_i32, %c0_i32_0 : i32, i32
  }
  func.func @transform_3(%arg0: i32) -> (i32, i32) {
    %c0_i32 = arith.constant 0 : i32
    %c0_i32_0 = arith.constant 0 : i32
    %c0_i32_1 = arith.constant 0 : i32
    return %c0_i32, %c0_i32_0 : i32, i32
  }
  func.func @transform_4(%arg0: i32) -> (i32, i32) {
    %c0_i32 = arith.constant 0 : i32
    %c0_i32_0 = arith.constant 0 : i32
    %c0_i32_1 = arith.constant 0 : i32
    return %c0_i32, %c0_i32_0 : i32, i32
  }
  func.func @transform_5(%arg0: i32) -> (i32, i32) {
    %c0_i32 = arith.constant 0 : i32
    %c0_i32_0 = arith.constant 0 : i32
    %c0_i32_1 = arith.constant 0 : i32
    return %c0_i32, %c0_i32_0 : i32, i32
  }
  func.func @transform_6(%arg0: i32) -> (i32, i32) {
    %c0_i32 = arith.constant 0 : i32
    %c0_i32_0 = arith.constant 0 : i32
    %c0_i32_1 = arith.constant 0 : i32
    return %c0_i32, %c0_i32_0 : i32, i32
  }
  func.func @transform_7(%arg0: i32) -> (i32, i32) {
    %c0_i32 = arith.constant 0 : i32
    %c0_i32_0 = arith.constant 0 : i32
    %c0_i32_1 = arith.constant 0 : i32
    return %c0_i32, %c0_i32_0 : i32, i32
  }
  func.func @transform_8(%arg0: i32) -> (i32, i32) {
    %c0_i32 = arith.constant 0 : i32
    %c0_i32_0 = arith.constant 0 : i32
    %c0_i32_1 = arith.constant 0 : i32
    return %c0_i32, %c0_i32_0 : i32, i32
  }
  func.func @transform_9(%arg0: i32) -> (i32, i32) {
    %c0_i32 = arith.constant 0 : i32
    %c0_i32_0 = arith.constant 0 : i32
    %c0_i32_1 = arith.constant 0 : i32
    return %c0_i32, %c0_i32_0 : i32, i32
  }
  func.func @transform_10(%arg0: i32) -> (i32, i32) {
    %c0_i32 = arith.constant 0 : i32
    %c0_i32_0 = arith.constant 0 : i32
    %c0_i32_1 = arith.constant 0 : i32
    return %c0_i32, %c0_i32_0 : i32, i32
  }
  func.func @transform_11(%arg0: i32) -> (i32, i32) {
    %c0_i32 = arith.constant 0 : i32
    %c0_i32_0 = arith.constant 0 : i32
    %c0_i32_1 = arith.constant 0 : i32
    return %c0_i32, %c0_i32_0 : i32, i32
  }
  func.func @transform_12(%arg0: i32) -> (i32, i32) {
    %c0_i32 = arith.constant 0 : i32
    %c0_i32_0 = arith.constant 0 : i32
    return %arg0, %c0_i32 : i32, i32
  }
}

</mosaic_0001>

<bundles_post_ra>
// kernel: geometry_net_forward.1
= control target key start
LH: loop header
LB: loop body
LE: loop exit
PB: predicated region body
PF: predicated region fallthrough
CT: control target
= control target key end

     0   :  { %17 = vsyncpa [#allocation3], 0  ;;  %s3793_s0 = inlined_call_operand.vmem [shape: f32[512,128], index: 0, kind: input, shape index: {}]   ;;  %s3794_s1 = inlined_call_operand.hbm [shape: f32[128,256], index: 1, kind: input, shape index: {}]   ;;  %s3795_s2 = inlined_call_operand.vmem [shape: f32[1,256], index: 2, kind: input, shape index: {}]   ;;  %s3796_s3 = inlined_call_operand.vmem [shape: f32[256,256], index: 3, kind: input, shape index: {}]   ;;  %s3797_s4 = inlined_call_operand.vmem [shape: f32[1,256], index: 4, kind: input, shape index: {}]   ;;  %s3798_s5 = inlined_call_operand.vmem [shape: f32[256,256], index: 5, kind: input, shape index: {}]   ;;  %s3799_s6 = inlined_call_operand.hbm [shape: f32[128,256], index: 6, kind: input, shape index: {}]   ;;  %s3800_s7 = inlined_call_operand.vmem [shape: f32[1,256], index: 7, kind: input, shape index: {}]   ;;  %s3801_s8 = inlined_call_operand.vmem [shape: f32[256,256], index: 8, kind: input, shape index: {}]   ;;  %s3802_s9 = inlined_call_operand.vmem [shape: f32[1,256], index: 9, kind: input, shape index: {}]   ;;  %s3803_s10 = inlined_call_operand.hbm [shape: f32[256,128], index: 10, kind: input, shape index: {}]   ;;  %s3804_s11 = inlined_call_operand.vmem [shape: f32[1,128], index: 11, kind: input, shape index: {}]   ;;  %s3805_s12 = inlined_call_operand.vmem [shape: f32[512,128], index: 12, kind: output, shape index: {}]  }
   0x1   :  { %18 = vsyncpa [#allocation5], 0  ;;  %s2516_s21 = smov 0  }
   0x2 LB: > { %s3806_s22 = sadd.s32 4294967295, %s2442_s21   ;;  %p2234_p0 = scmp.ge.s32.totalorder %s2442_s21, 1  ;;  %s2442_s21 = sphi %s2516_s21, %s24_s21  }
   0x3   : > { %p312_p1 = scmp.lt.s32.totalorder %s2442_s21, 5  ;;  %p2526_p2 = scmp.eq.s32.totalorder %s3806_s22, 0 }
   0x4   : > { %s349_s26 = sshll.u32 %s3799_s6, 4  ;;  %s323_s30 = sshll.u32 %s3794_s1, 4  ;;  %s350_s26 = int_to_ptr.hbm [resolvable:$true] %s349_s26  ;;  %s324_s30 = int_to_ptr.hbm [resolvable:$true] %s323_s30 }
   0x5   : > { %p2533_p3 = pnand %p2234_p0, %p312_p1  ;;  %s2444_s13 = smov [#allocation4]  }
   0x6   : > { %s351_s14 = sshll.u32 %s2444_s13, 4  ;;  %s2445_s16 = smov [#allocation2]   ;;  %s352_s14 = int_to_ptr.vmem [resolvable:$true] %s351_s14 }
   0x7   : > { %p2293_p4 = pneg %p2533_p3  ;;  %s325_s17 = sshll.u32 %s2445_s16, 4  ;;  %s326_s17 = int_to_ptr.vmem [resolvable:$true] %s325_s17 }
   0x8   : > { %s372_s20 = sshll.u32 %s3803_s10, 4  ;;  %s2446_s24 = smov 256   ;;  %s373_s20 = int_to_ptr.hbm [resolvable:$true] %s372_s20 }
   0x9   : > { %p2544_p5 = pnand %p2526_p2, %p2293_p4  ;;  %s2447_s25 = smov 16  }
   0xa   : > { %s2448_s28 = smov [#allocation6]   ;;  %s2449_s13 = smov 128  }
   0xb   : > { %2299 = dma.hbm_to_vmem [thread:$0]  (!%p2544_p5), %s350_s26, 4096, %s352_s14, [#allocation5], %s2446_s24, %s2446_s24, %s2447_s25  }
   0xc   : > { %2296 = dma.hbm_to_vmem [thread:$0]  (!%p2544_p5), %s324_s30, 4096, %s326_s17, [#allocation3], %s2446_s24, %s2446_s24, %s2447_s25  }
   0xd   : > { %s374_s29 = sshll.u32 %s2448_s28, 4  ;;  %s2450_s22 = smov 8   ;;  %s375_s29 = int_to_ptr.vmem [resolvable:$true] %s374_s29 }
   0xe   : > { %2302 = dma.hbm_to_vmem [thread:$0]  (!%p2544_p5), %s373_s20, 4096, %s375_s29, [#allocation5], %s2449_s13, %s2449_s13, %s2450_s22  }
   0xf   : > { %402 = sbr.rel (%p2533_p3) target bundleno = 966 (0x3c6), region = 68 }
  0x14   : > { %2433 = dma.done.wait (%p2526_p2), [#allocation3], 4096  }
  0x15   : > { %2435 = vsyncadd (%p2526_p2), [#allocation3], 4294963200 }
  0x16   : > { %2437 = dma.done.wait (%p2526_p2), [#allocation5], 8192  }
  0x17   : > { %2439 = vsyncadd (%p2526_p2), [#allocation5], 4294959104  ;;  %v513_v0 = vld [vmem:[#allocation2 + $0xf0] sm:$0xff]  ;;  %v514_v1 = vld [vmem:[#allocation2 + $0xf8] sm:$0xff]  ;;  %s3818_s22 = sadd.s32 4294967295, %s2442_s21  }
  0x18   : > { %v511_v2 = vld [vmem:[#allocation2 + $0xe0] sm:$0xff]  ;;  %521 = vmatpush.msra.mxu0 %v513_v0  ;;  %586 = vmatpush.msra.mxu1 %v514_v1  ;;  %v512_v3 = vld [vmem:[#allocation2 + $0xe8] sm:$0xff]  ;;  %v509_v4 = vld [vmem:[#allocation2 + $0xd0] sm:$0xff]  ;;  %s2243_s23 = sshll.u32 %s3818_s22, 4 }
  0x19   : > { %v510_v5 = vld [vmem:[#allocation2 + $0xd8] sm:$0xff]  ;;  %2249 = vmatpush.msra.mxu2 %v513_v0  ;;  %2265 = vmatpush.msra.mxu3 %v514_v1  ;;  %v507_v6 = vld [vmem:[#allocation2 + $0xc0] sm:$0xff]  ;;  %v508_v7 = vld [vmem:[#allocation2 + $0xc8] sm:$0xff]  ;;  %p456_p6 = scmp.lt.s32.totalorder %s2243_s23, 63 }
  0x1a   : > { %522 = vmatpush.msra.mxu0 %v511_v2  ;;  %587 = vmatpush.msra.mxu1 %v512_v3  ;;  %v505_v8 = vld [vmem:[#allocation2 + $0xb0] sm:$0xff]  ;;  %v506_v9 = vld [vmem:[#allocation2 + $0xb8] sm:$0xff]  ;;  %v503_v10 = vld [vmem:[#allocation2 + $0xa0] sm:$0xff] }
  0x1b   : > { %2250 = vmatpush.msra.mxu2 %v511_v2  ;;  %2266 = vmatpush.msra.mxu3 %v512_v3  ;;  %v504_v11 = vld [vmem:[#allocation2 + $0xa8] sm:$0xff]  ;;  %v501_v12 = vld [vmem:[#allocation2 + $0x90] sm:$0xff]  ;;  %v502_v13 = vld [vmem:[#allocation2 + $0x98] sm:$0xff]  ;;  %s3828_s23 = smov (!%p456_p6, %s2243_s23), 63 }
  0x1c   : > { %523 = vmatpush.msra.mxu0 %v509_v4  ;;  %588 = vmatpush.msra.mxu1 %v510_v5  ;;  %v499_v14 = vld [vmem:[#allocation2 + $0x80] sm:$0xff]  ;;  %v500_v15 = vld [vmem:[#allocation2 + $0x88] sm:$0xff]  ;;  %v497_v16 = vld [vmem:[#allocation2 + $0x70] sm:$0xff]  ;;  %s2244_s26 = sshll.u32 %s3828_s23, 3 }
  0x1d   : > { %2251 = vmatpush.msra.mxu2 %v509_v4  ;;  %2267 = vmatpush.msra.mxu3 %v510_v5  ;;  %v498_v17 = vld [vmem:[#allocation2 + $0x78] sm:$0xff]  ;;  %v495_v18 = vld [vmem:[#allocation2 + $0x60] sm:$0xff]  ;;  %v496_v19 = vld [vmem:[#allocation2 + $0x68] sm:$0xff]  ;;  %s2577_s14 = scalar_lea.vmem %s3793_s0, %s2244_s26 }
  0x1e   : > { %524 = vmatpush.msra.mxu0 %v507_v6  ;;  %589 = vmatpush.msra.mxu1 %v508_v7  ;;  %v493_v20 = vld [vmem:[#allocation2 + $0x50] sm:$0xff]  ;;  %v494_v21 = vld [vmem:[#allocation2 + $0x58] sm:$0xff]  ;;  %v491_v22 = vld [vmem:[#allocation2 + $0x40] sm:$0xff] }
  0x1f   : > { %2252 = vmatpush.msra.mxu2 %v507_v6  ;;  %2268 = vmatpush.msra.mxu3 %v508_v7  ;;  %v492_v23 = vld [vmem:[#allocation2 + $0x48] sm:$0xff]  ;;  %v489_v24 = vld [vmem:[#allocation2 + $0x30] sm:$0xff]  ;;  %v490_v25 = vld [vmem:[#allocation2 + $0x38] sm:$0xff] }
  0x20   : > { %525 = vmatpush.msra.mxu0 %v505_v8  ;;  %590 = vmatpush.msra.mxu1 %v506_v9  ;;  %v487_v26 = vld [vmem:[#allocation2 + $0x20] sm:$0xff]  ;;  %v488_v27 = vld [vmem:[#allocation2 + $0x28] sm:$0xff]  ;;  %v485_v28 = vld [vmem:[#allocation2 + $0x10] sm:$0xff] }
  0x21   : > { %2253 = vmatpush.msra.mxu2 %v505_v8  ;;  %2269 = vmatpush.msra.mxu3 %v506_v9  ;;  %v486_v29 = vld [vmem:[#allocation2 + $0x18] sm:$0xff]  ;;  %v483_v30 = vld [vmem:[#allocation2] sm:$0xff]  ;;  %v484_v31 = vld [vmem:[#allocation2 + $0x8] sm:$0xff] }
  0x22   : > { %526 = vmatpush.msra.mxu0 %v503_v10  ;;  %591 = vmatpush.msra.mxu1 %v504_v11  ;;  %v2580_v32 = vld [vmem:[%s2577_s14] sm:$0xff]  ;;  %v2585_v33 = vld [vmem:[%s2577_s14 + $0x8] sm:$0xff]  ;;  %v469_v34 = vld [vmem:[%s2577_s14 + $0x10] sm:$0xff] }
  0x23   : > { %2254 = vmatpush.msra.mxu2 %v503_v10  ;;  %2270 = vmatpush.msra.mxu3 %v504_v11  ;;  %v470_v35 = vld [vmem:[%s2577_s14 + $0x18] sm:$0xff]  ;;  %v475_v36 = vld [vmem:[%s2577_s14 + $0x40] sm:$0xff]  ;;  %v713_v37 = vld [vmem:[%s3796_s3 + $0xf0] sm:$0xff] }
  0x24   : > { %527 = vmatpush.msra.mxu0 %v501_v12  ;;  %592 = vmatpush.msra.mxu1 %v502_v13  ;;  %v745_v38 = vld [vmem:[%s3796_s3 + $0x1f0] sm:$0xff]  ;;  %v711_v39 = vld [vmem:[%s3796_s3 + $0xe0] sm:$0xff]  ;;  %v476_v44 = vld [vmem:[%s2577_s14 + $0x48] sm:$0xff] }
  0x25   : > { %2255 = vmatpush.msra.mxu2 %v501_v12  ;;  %2271 = vmatpush.msra.mxu3 %v502_v13  ;;  %v743_v40 = vld [vmem:[%s3796_s3 + $0x1e0] sm:$0xff]  ;;  %v709_v41 = vld [vmem:[%s3796_s3 + $0xd0] sm:$0xff]  ;;  %v714_v49 = vld [vmem:[%s3796_s3 + $0xf8] sm:$0xff] }
  0x26   : > { %528 = vmatpush.msra.mxu0 %v499_v14  ;;  %593 = vmatpush.msra.mxu1 %v500_v15  ;;  %v741_v42 = vld [vmem:[%s3796_s3 + $0x1d0] sm:$0xff]  ;;  %v471_v43 = vld [vmem:[%s2577_s14 + $0x20] sm:$0xff]  ;;  %v712_v50 = vld [vmem:[%s3796_s3 + $0xe8] sm:$0xff] }
  0x27   : > { %2256 = vmatpush.msra.mxu2 %v499_v14  ;;  %2272 = vmatpush.msra.mxu3 %v500_v15  ;;  %v707_v45 = vld [vmem:[%s3796_s3 + $0xc0] sm:$0xff]  ;;  %v705_v47 = vld [vmem:[%s3796_s3 + $0xb0] sm:$0xff]  ;;  %v746_v51 = vld [vmem:[%s3796_s3 + $0x1f8] sm:$0xff] }
  0x28   : > { %529 = vmatpush.msra.mxu0 %v497_v16  ;;  %594 = vmatpush.msra.mxu1 %v498_v17  ;;  %v739_v46 = vld [vmem:[%s3796_s3 + $0x1c0] sm:$0xff]  ;;  %v737_v48 = vld [vmem:[%s3796_s3 + $0x1b0] sm:$0xff]  ;;  %v744_v54 = vld [vmem:[%s3796_s3 + $0x1e8] sm:$0xff] }
  0x29   : > { %2257 = vmatpush.msra.mxu2 %v497_v16  ;;  %2273 = vmatpush.msra.mxu3 %v498_v17  ;;  %v703_v52 = vld [vmem:[%s3796_s3 + $0xa0] sm:$0xff]  ;;  %v710_v55 = vld [vmem:[%s3796_s3 + $0xd8] sm:$0xff]  ;;  %v472_v57 = vld [vmem:[%s2577_s14 + $0x28] sm:$0xff] }
  0x2a   : > { %530 = vmatpush.msra.mxu0 %v495_v18  ;;  %595 = vmatpush.msra.mxu1 %v496_v19  ;;  %v735_v53 = vld [vmem:[%s3796_s3 + $0x1a0] sm:$0xff]  ;;  %v742_v56 = vld [vmem:[%s3796_s3 + $0x1d8] sm:$0xff]  ;;  %v477_v58 = vld [vmem:[%s2577_s14 + $0x50] sm:$0xff] }
  0x2b   : > { %2258 = vmatpush.msra.mxu2 %v495_v18  ;;  %2274 = vmatpush.msra.mxu3 %v496_v19  ;;  %v701_v59 = vld [vmem:[%s3796_s3 + $0x90] sm:$0xff]  ;;  %v708_v61 = vld [vmem:[%s3796_s3 + $0xc8] sm:$0xff]  ;;  %v699_v62 = vld [vmem:[%s3796_s3 + $0x80] sm:$0xff] }
  0x2c   : > { %531 = vmatpush.msra.mxu0 %v493_v20  ;;  %596 = vmatpush.msra.mxu1 %v494_v21  ;;  %v733_v60 = vld [vmem:[%s3796_s3 + $0x190] sm:$0xff]  ;;  %v731_v63 = vld [vmem:[%s3796_s3 + $0x180] sm:$0xff]  ;;  %v740_v0 = vld [vmem:[%s3796_s3 + $0x1c8] sm:$0xff] }
  0x2d   : > { %2259 = vmatpush.msra.mxu2 %v493_v20  ;;  %2275 = vmatpush.msra.mxu3 %v494_v21  ;;  %v706_v1 = vld [vmem:[%s3796_s3 + $0xb8] sm:$0xff]  ;;  %v697_v3 = vld [vmem:[%s3796_s3 + $0x70] sm:$0xff]  ;;  %v704_v5 = vld [vmem:[%s3796_s3 + $0xa8] sm:$0xff] }
  0x2e   : > { %532 = vmatpush.msra.mxu0 %v491_v22  ;;  %597 = vmatpush.msra.mxu1 %v492_v23  ;;  %v738_v2 = vld [vmem:[%s3796_s3 + $0x1b8] sm:$0xff]  ;;  %v729_v4 = vld [vmem:[%s3796_s3 + $0x170] sm:$0xff]  ;;  %v736_v6 = vld [vmem:[%s3796_s3 + $0x1a8] sm:$0xff] }
  0x2f   : > { %2260 = vmatpush.msra.mxu2 %v491_v22  ;;  %2276 = vmatpush.msra.mxu3 %v492_v23  ;;  %v473_v7 = vld [vmem:[%s2577_s14 + $0x30] sm:$0xff]  ;;  %v478_v8 = vld [vmem:[%s2577_s14 + $0x58] sm:$0xff]  ;;  %v695_v9 = vld [vmem:[%s3796_s3 + $0x60] sm:$0xff] }
  0x30   : > { %533 = vmatpush.msra.mxu0 %v489_v24  ;;  %598 = vmatpush.msra.mxu1 %v490_v25  ;;  %v727_v10 = vld [vmem:[%s3796_s3 + $0x160] sm:$0xff]  ;;  %v702_v11 = vld [vmem:[%s3796_s3 + $0x98] sm:$0xff]  ;;  %v693_v13 = vld [vmem:[%s3796_s3 + $0x50] sm:$0xff] }
  0x31   : > { %2261 = vmatpush.msra.mxu2 %v489_v24  ;;  %2277 = vmatpush.msra.mxu3 %v490_v25  ;;  %v734_v12 = vld [vmem:[%s3796_s3 + $0x198] sm:$0xff]  ;;  %v725_v14 = vld [vmem:[%s3796_s3 + $0x150] sm:$0xff]  ;;  %v700_v15 = vld [vmem:[%s3796_s3 + $0x88] sm:$0xff] }
  0x32   : > { %534 = vmatpush.msra.mxu0 %v487_v26  ;;  %599 = vmatpush.msra.mxu1 %v488_v27  ;;  %v732_v16 = vld [vmem:[%s3796_s3 + $0x188] sm:$0xff]  ;;  %v691_v17 = vld [vmem:[%s3796_s3 + $0x40] sm:$0xff]  ;;  %v698_v19 = vld [vmem:[%s3796_s3 + $0x78] sm:$0xff] }
  0x33   : > { %2262 = vmatpush.msra.mxu2 %v487_v26  ;;  %2278 = vmatpush.msra.mxu3 %v488_v27  ;;  %v723_v18 = vld [vmem:[%s3796_s3 + $0x140] sm:$0xff]  ;;  %v730_v20 = vld [vmem:[%s3796_s3 + $0x178] sm:$0xff]  ;;  %v689_v23 = vld [vmem:[%s3796_s3 + $0x30] sm:$0xff] }
  0x34   : > { %535 = vmatpush.msra.mxu0 %v485_v28  ;;  %600 = vmatpush.msra.mxu1 %v486_v29  ;;  %v2725_v21 = vld [vmem:[%s2577_s14 + $0x38] sm:$0xff]  ;;  %v479_v22 = vld [vmem:[%s2577_s14 + $0x60] sm:$0xff]  ;;  %v721_v24 = vld [vmem:[%s3796_s3 + $0x130] sm:$0xff] }
  0x35   : > { %2263 = vmatpush.msra.mxu2 %v485_v28  ;;  %2279 = vmatpush.msra.mxu3 %v486_v29  ;;  %v696_v25 = vld [vmem:[%s3796_s3 + $0x68] sm:$0xff]  ;;  %v687_v27 = vld [vmem:[%s3796_s3 + $0x20] sm:$0xff]  ;;  %v694_v29 = vld [vmem:[%s3796_s3 + $0x58] sm:$0xff] }
  0x36   : > { %536 = vmatpush.msra.mxu0 %v483_v30  ;;  %601 = vmatpush.msra.mxu1 %v484_v31  ;;  %v728_v26 = vld [vmem:[%s3796_s3 + $0x168] sm:$0xff]  ;;  %v719_v28 = vld [vmem:[%s3796_s3 + $0x120] sm:$0xff] }
  0x37   : > { %537 = vmatmul.f32.vlgmr.msra.gmra.mxu0 %v2580_v32  ;;  %602 = vmatmul.f32.vlgmr.msra.gmra.mxu1 %v2580_v32 }
  0x38   : > { %2264 = vmatpush.msra.mxu2 %v483_v30  ;;  %2280 = vmatpush.msra.mxu3 %v484_v31  ;;  %v726_v30 = vld [vmem:[%s3796_s3 + $0x158] sm:$0xff]  ;;  %v685_v31 = vld [vmem:[%s3796_s3 + $0x10] sm:$0xff] }
  0x39   : > { %561 = vmatmul.f32.vlgmr.msra.gmra.mxu2 %v475_v36  ;;  %626 = vmatmul.f32.vlgmr.msra.gmra.mxu3 %v475_v36  ;;  %v724_v36 = vld [vmem:[%s3796_s3 + $0x148] sm:$0xff] }
  0x3a   : > { %753 = vmatpush.msrb.mxu2 %v713_v37  ;;  %818 = vmatpush.msrb.mxu3 %v745_v38  ;;  %v480_v37 = vld [vmem:[%s2577_s14 + $0x68] sm:$0xff]  ;;  %v690_v38 = vld [vmem:[%s3796_s3 + $0x38] sm:$0xff] }
  0x3b   : > { %883 = vmatpush.msrb.mxu0 %v714_v49  ;;  %948 = vmatpush.msrb.mxu1 %v746_v51  ;;  %v1139_v49 = vld [vmem:[#allocation4 + $0xf0] sm:$0xff]  ;;  %v1140_v51 = vld [vmem:[#allocation4 + $0xf8] sm:$0xff] }
  0x3c   : > { %754 = vmatpush.msrb.mxu2 %v711_v39  ;;  %819 = vmatpush.msrb.mxu3 %v743_v40  ;;  %v481_v39 = vld [vmem:[%s2577_s14 + $0x70] sm:$0xff]  ;;  %v482_v40 = vld [vmem:[%s2577_s14 + $0x78] sm:$0xff] }
  0x3d   : > { %884 = vmatpush.msrb.mxu0 %v712_v50  ;;  %949 = vmatpush.msrb.mxu1 %v744_v54  ;;  %v716_v50 = vld [vmem:[%s3796_s3 + $0x108] sm:$0xff]  ;;  %v1135_v54 = vld [vmem:[#allocation4 + $0xd0] sm:$0xff] }
  0x3e   : > { %755 = vmatpush.msrb.mxu2 %v709_v41  ;;  %820 = vmatpush.msrb.mxu3 %v741_v42  ;;  %v688_v41 = vld [vmem:[%s3796_s3 + $0x28] sm:$0xff]  ;;  %v722_v42 = vld [vmem:[%s3796_s3 + $0x138] sm:$0xff] }
  0x3f   : > { %540 = vmatmul.f32.gmra.mxu0 %v2585_v33  ;;  %605 = vmatmul.f32.gmra.mxu1 %v2585_v33 }
  0x40   : > { %756 = vmatpush.msrb.mxu2 %v707_v45  ;;  %821 = vmatpush.msrb.mxu3 %v739_v46  ;;  %v683_v45 = vld [vmem:[%s3796_s3] sm:$0xff] }
  0x41   : > { %564 = vmatmul.f32.gmra.mxu2 %v476_v44  ;;  %629 = vmatmul.f32.gmra.mxu3 %v476_v44  ;;  %v720_v44 = vld [vmem:[%s3796_s3 + $0x128] sm:$0xff]  ;;  %v715_v46 = vld [vmem:[%s3796_s3 + $0x100] sm:$0xff] }
  0x42   : > { %757 = vmatpush.msrb.mxu2 %v705_v47  ;;  %822 = vmatpush.msrb.mxu3 %v737_v48  ;;  %v684_v47 = vld [vmem:[%s3796_s3 + $0x8] sm:$0xff]  ;;  %v718_v48 = vld [vmem:[%s3796_s3 + $0x118] sm:$0xff] }
  0x43   : > { %885 = vmatpush.msrb.mxu0 %v710_v55  ;;  %950 = vmatpush.msrb.mxu1 %v742_v56  ;;  %v1136_v55 = vld [vmem:[#allocation4 + $0xd8] sm:$0xff]  ;;  %v515_v56 = vld [vmem:[%s3795_s2] sm:$0x3] }
  0x44   : > { %758 = vmatpush.msrb.mxu2 %v703_v52  ;;  %823 = vmatpush.msrb.mxu3 %v735_v53  ;;  %v1137_v52 = vld [vmem:[#allocation4 + $0xe0] sm:$0xff]  ;;  %v1138_v53 = vld [vmem:[#allocation4 + $0xe8] sm:$0xff] }
  0x45   : > { %886 = vmatpush.msrb.mxu0 %v708_v61  ;;  %951 = vmatpush.msrb.mxu1 %v740_v0 }
  0x46   : > { %759 = vmatpush.msrb.mxu2 %v701_v59  ;;  %824 = vmatpush.msrb.mxu3 %v733_v60  ;;  %v1133_v59 = vld [vmem:[#allocation4 + $0xc0] sm:$0xff]  ;;  %v1134_v60 = vld [vmem:[#allocation4 + $0xc8] sm:$0xff] }
  0x47   : > { %543 = vmatmul.f32.gmra.mxu0 %v469_v34  ;;  %608 = vmatmul.f32.gmra.mxu1 %v469_v34  ;;  %v717_v34 = vld [vmem:[%s3796_s3 + $0x110] sm:$0xff] }
  0x48   : > { %760 = vmatpush.msrb.mxu2 %v699_v62  ;;  %825 = vmatpush.msrb.mxu3 %v731_v63 }
  0x49   : > { %567 = vmatmul.f32.gmra.mxu2 %v477_v58  ;;  %632 = vmatmul.f32.gmra.mxu3 %v477_v58  ;;  %v2804_v58 = vperm.slane %v515_v56, 1 }
  0x4a   : > { %887 = vmatpush.msrb.mxu0 %v706_v1  ;;  %952 = vmatpush.msrb.mxu1 %v738_v2 }
  0x4b   : > { %761 = vmatpush.msrb.mxu2 %v697_v3  ;;  %826 = vmatpush.msrb.mxu3 %v729_v4  ;;  %v1131_v3 = vld [vmem:[#allocation4 + $0xb0] sm:$0xff]  ;;  %v1132_v4 = vld [vmem:[#allocation4 + $0xb8] sm:$0xff] }
  0x4c   : > { %888 = vmatpush.msrb.mxu0 %v704_v5  ;;  %953 = vmatpush.msrb.mxu1 %v736_v6 }
  0x4d   : > { %762 = vmatpush.msrb.mxu2 %v695_v9  ;;  %827 = vmatpush.msrb.mxu3 %v727_v10 }
  0x4e   : > { %889 = vmatpush.msrb.mxu0 %v702_v11  ;;  %954 = vmatpush.msrb.mxu1 %v734_v12  ;;  %v1129_v11 = vld [vmem:[#allocation4 + $0xa0] sm:$0xff]  ;;  %v1130_v12 = vld [vmem:[#allocation4 + $0xa8] sm:$0xff] }
  0x4f   : > { %546 = vmatmul.f32.gmra.mxu0 %v470_v35  ;;  %611 = vmatmul.f32.gmra.mxu1 %v470_v35  ;;  %v692_v35 = vld [vmem:[%s3796_s3 + $0x48] sm:$0xff] }
  0x50   : > { %763 = vmatpush.msrb.mxu2 %v693_v13  ;;  %828 = vmatpush.msrb.mxu3 %v725_v14 }
  0x51   : > { %570 = vmatmul.f32.gmra.mxu2 %v478_v8  ;;  %635 = vmatmul.f32.gmra.mxu3 %v478_v8 }
  0x52   : > { %890 = vmatpush.msrb.mxu0 %v700_v15  ;;  %955 = vmatpush.msrb.mxu1 %v732_v16 }
  0x53   : > { %764 = vmatpush.msrb.mxu2 %v691_v17  ;;  %829 = vmatpush.msrb.mxu3 %v723_v18 }
  0x54   : > { %891 = vmatpush.msrb.mxu0 %v698_v19  ;;  %956 = vmatpush.msrb.mxu1 %v730_v20  ;;  %v1127_v19 = vld [vmem:[#allocation4 + $0x90] sm:$0xff]  ;;  %v1128_v20 = vld [vmem:[#allocation4 + $0x98] sm:$0xff] }
  0x55   : > { %765 = vmatpush.msrb.mxu2 %v689_v23  ;;  %830 = vmatpush.msrb.mxu3 %v721_v24 }
  0x56   : > { %892 = vmatpush.msrb.mxu0 %v696_v25  ;;  %957 = vmatpush.msrb.mxu1 %v728_v26 }
  0x57   : > { %549 = vmatmul.f32.gmra.mxu0 %v471_v43  ;;  %614 = vmatmul.f32.gmra.mxu1 %v471_v43  ;;  %v686_v43 = vld [vmem:[%s3796_s3 + $0x18] sm:$0xff] }
  0x58   : > { %766 = vmatpush.msrb.mxu2 %v687_v27  ;;  %831 = vmatpush.msrb.mxu3 %v719_v28  ;;  %v1125_v28 = vld [vmem:[#allocation4 + $0x80] sm:$0xff] }
  0x59   : > { %573 = vmatmul.f32.gmra.mxu2 %v479_v22  ;;  %638 = vmatmul.f32.gmra.mxu3 %v479_v22 }
  0x5a   : > { %893 = vmatpush.msrb.mxu0 %v694_v29  ;;  %958 = vmatpush.msrb.mxu1 %v726_v30  ;;  %v1126_v29 = vld [vmem:[#allocation4 + $0x88] sm:$0xff] }
  0x5b   : > { %767 = vmatpush.msrb.mxu2 %v685_v31  ;;  %832 = vmatpush.msrb.mxu3 %v717_v34 }
  0x5c   : > { %894 = vmatpush.msrb.mxu0 %v692_v35  ;;  %959 = vmatpush.msrb.mxu1 %v724_v36 }
  0x5d   : > { %768 = vmatpush.msrb.mxu2 %v683_v45  ;;  %833 = vmatpush.msrb.mxu3 %v715_v46 }
  0x5e   : > { %895 = vmatpush.msrb.mxu0 %v690_v38  ;;  %960 = vmatpush.msrb.mxu1 %v722_v42  ;;  %v1123_v38 = vld [vmem:[#allocation4 + $0x70] sm:$0xff] }
  0x5f   : > { %552 = vmatmul.f32.gmra.mxu0 %v472_v57  ;;  %617 = vmatmul.f32.gmra.mxu1 %v472_v57  ;;  %v2802_v57 = vperm.slane %v515_v56, 0 }
  0x60   : > { %896 = vmatpush.msrb.mxu0 %v688_v41  ;;  %961 = vmatpush.msrb.mxu1 %v720_v44 }
  0x61   : > { %576 = vmatmul.f32.gmra.mxu2 %v480_v37  ;;  %641 = vmatmul.f32.gmra.mxu3 %v480_v37 }
  0x62   : > { %897 = vmatpush.msrb.mxu0 %v686_v43  ;;  %962 = vmatpush.msrb.mxu1 %v718_v48  ;;  %v1121_v48 = vld [vmem:[#allocation4 + $0x60] sm:$0xff] }
  0x63   : > { %1142 = vmatpush.msra.mxu2 %v1139_v49  ;;  %1207 = vmatpush.msra.mxu3 %v1140_v51  ;;  %v1122_v49 = vld [vmem:[#allocation4 + $0x68] sm:$0xff] }
  0x64   : > { %898 = vmatpush.msrb.mxu0 %v684_v47  ;;  %963 = vmatpush.msrb.mxu1 %v716_v50 }
  0x65   : > { %1143 = vmatpush.msra.mxu2 %v1137_v52  ;;  %1208 = vmatpush.msra.mxu3 %v1138_v53 }
  0x67   : > { %555 = vmatmul.f32.gmra.mxu0 %v473_v7  ;;  %620 = vmatmul.f32.gmra.mxu1 %v473_v7 }
  0x68   : > { %1144 = vmatpush.msra.mxu2 %v1135_v54  ;;  %1209 = vmatpush.msra.mxu3 %v1136_v55 }
  0x69   : > { %579 = vmatmul.f32.gmra.mxu2 %v481_v39  ;;  %644 = vmatmul.f32.gmra.mxu3 %v481_v39  ;;  %v1124_v39 = vld [vmem:[#allocation4 + $0x78] sm:$0xff] }
  0x6a   : > { %1145 = vmatpush.msra.mxu2 %v1133_v59  ;;  %1210 = vmatpush.msra.mxu3 %v1134_v60  ;;  %v1119_v60 = vld [vmem:[#allocation4 + $0x50] sm:$0xff] }
  0x6c   : > { %1146 = vmatpush.msra.mxu2 %v1131_v3  ;;  %1211 = vmatpush.msra.mxu3 %v1132_v4 }
  0x6e   : > { %1147 = vmatpush.msra.mxu2 %v1129_v11  ;;  %1212 = vmatpush.msra.mxu3 %v1130_v12 }
  0x6f   : > { %558 = vmatmul.f32.gmra.mxu0 %v2725_v21  ;;  %623 = vmatmul.f32.gmra.mxu1 %v2725_v21 }
  0x70   : > { %1148 = vmatpush.msra.mxu2 %v1127_v19  ;;  %1213 = vmatpush.msra.mxu3 %v1128_v20 }
  0x71   : > { %582 = vmatmul.f32.gmra.mxu2 %v482_v40  ;;  %647 = vmatmul.f32.gmra.mxu3 %v482_v40 }
  0x72   : > { %1149 = vmatpush.msra.mxu2 %v1125_v28  ;;  %1214 = vmatpush.msra.mxu3 %v1126_v29  ;;  %v1075_v28 = vld [vmem:[%s3798_s5 + $0xf0] sm:$0xff]  ;;  %v1101_v29 = vld [vmem:[%s3798_s5 + $0x1c0] sm:$0xff] }
  0x73   : > { %1272 = vmatpush.msra.mxu0 %v1075_v28 }
  0x74   : > { %1150 = vmatpush.msra.mxu2 %v1123_v38  ;;  %1215 = vmatpush.msra.mxu3 %v1124_v39  ;;  %v1097_v39 = vld [vmem:[%s3798_s5 + $0x1a0] sm:$0xff] }
  0x76   : > { %1151 = vmatpush.msra.mxu2 %v1121_v48  ;;  %1216 = vmatpush.msra.mxu3 %v1122_v49 }
  0x78   : > { %1152 = vmatpush.msra.mxu2 %v1119_v60  ;;  %v1109_v60 = vld [vmem:[#allocation4] sm:$0xff] }
  0xb4   : > { %v538_v61 = vpop.f32.mrf.mxu0  ;;  %v603_v62 = vpop.f32.mrf.mxu1 }
  0xb5   : > { %v539_v63 = vadd.f32 %v538_v61, %v2802_v57  ;;  %v604_v0 = vadd.f32 %v603_v62, %v2804_v58  ;;  %v1120_v61 = vld [vmem:[#allocation4 + $0x58] sm:$0xff] }
  0xb6   : > { %1217 = vmatpush.msra.mxu3 %v1120_v61  ;;  %v1061_v61 = vld [vmem:[%s3798_s5 + $0x80] sm:$0xff] }
  0xb7   : > { %v651_v1 = vmax.f32 %v539_v63, 0.0  ;;  %v652_v2 = vmax.f32 %v604_v0, 0.0 }
  0xb9   : > { %769 = vmatmul.f32.vlgmr.msrb.gmra.mxu2 %v651_v1  ;;  %834 = vmatmul.f32.vlgmr.msrb.gmra.mxu3 %v652_v2 }
  0xba   : > { %899 = vmatmul.f32.vlgmr.msrb.gmra.mxu0 %v651_v1  ;;  %964 = vmatmul.f32.vlgmr.msrb.gmra.mxu1 %v652_v2 }
  0xbc   : > { %v541_v5 = vpop.f32.mrf.mxu0  ;;  %v606_v6 = vpop.f32.mrf.mxu1 }
  0xbd   : > { %v542_v7 = vadd.f32 %v541_v5, %v2802_v57  ;;  %v607_v8 = vadd.f32 %v606_v6, %v2804_v58  ;;  %v562_v46 = vpop.f32.mrf.mxu2  ;;  %v627_v47 = vpop.f32.mrf.mxu3  ;;  %v1117_v6 = vld [vmem:[#allocation4 + $0x40] sm:$0xff] }
  0xbe   : > { %v563_v4 = vadd.f32 %v562_v46, %v2802_v57  ;;  %v628_v5 = vadd.f32 %v627_v47, %v2804_v58  ;;  %1153 = vmatpush.msra.mxu2 %v1117_v6  ;;  %v1067_v46 = vld [vmem:[%s3798_s5 + $0xb0] sm:$0xff]  ;;  %v1093_v47 = vld [vmem:[%s3798_s5 + $0x180] sm:$0xff] }
  0xbf   : > { %v653_v9 = vmax.f32 %v542_v7, 0.0  ;;  %v654_v10 = vmax.f32 %v607_v8, 0.0  ;;  %v1118_v7 = vld [vmem:[#allocation4 + $0x48] sm:$0xff] }
  0xc0   : > { %1218 = vmatpush.msra.mxu3 %v1118_v7  ;;  %v668_v11 = vmax.f32 %v628_v5, 0.0  ;;  %v1083_v7 = vld [vmem:[%s3798_s5 + $0x130] sm:$0xff] }
  0xc1   : > { %772 = vmatmul.f32.gmra.mxu2 %v653_v9  ;;  %837 = vmatmul.f32.gmra.mxu3 %v654_v10 }
  0xc2   : > { %902 = vmatmul.f32.gmra.mxu0 %v653_v9  ;;  %967 = vmatmul.f32.gmra.mxu1 %v654_v10  ;;  %v667_v10 = vmax.f32 %v563_v4, 0.0  ;;  %v1057_v4 = vld [vmem:[%s3798_s5 + $0x60] sm:$0xff] }
  0xc4   : > { %v544_v13 = vpop.f32.mrf.mxu0  ;;  %v609_v14 = vpop.f32.mrf.mxu1 }
  0xc5   : > { %v545_v15 = vadd.f32 %v544_v13, %v2802_v57  ;;  %v610_v16 = vadd.f32 %v609_v14, %v2804_v58  ;;  %v565_v56 = vpop.f32.mrf.mxu2  ;;  %v630_v59 = vpop.f32.mrf.mxu3  ;;  %v1115_v14 = vld [vmem:[#allocation4 + $0x30] sm:$0xff] }
  0xc6   : > { %v566_v12 = vadd.f32 %v565_v56, %v2802_v57  ;;  %v631_v13 = vadd.f32 %v630_v59, %v2804_v58  ;;  %1154 = vmatpush.msra.mxu2 %v1115_v14  ;;  %v1089_v59 = vld [vmem:[%s3798_s5 + $0x160] sm:$0xff]  ;;  %v1108_v14 = vld [vmem:[%s3798_s5 + $0x1f8] sm:$0xff] }
  0xc7   : > { %v655_v17 = vmax.f32 %v545_v15, 0.0  ;;  %v656_v18 = vmax.f32 %v610_v16, 0.0  ;;  %v1116_v15 = vld [vmem:[#allocation4 + $0x38] sm:$0xff]  ;;  %v1107_v16 = vld [vmem:[%s3798_s5 + $0x1f0] sm:$0xff] }
  0xc8   : > { %1219 = vmatpush.msra.mxu3 %v1116_v15  ;;  %1337 = vmatpush.msra.mxu1 %v1107_v16  ;;  %v670_v19 = vmax.f32 %v631_v13, 0.0  ;;  %v1053_v13 = vld [vmem:[%s3798_s5 + $0x40] sm:$0xff] }
  0xc9   : > { %775 = vmatmul.f32.gmra.mxu2 %v655_v17  ;;  %840 = vmatmul.f32.gmra.mxu3 %v656_v18 }
  0xca   : > { %905 = vmatmul.f32.gmra.mxu0 %v655_v17  ;;  %970 = vmatmul.f32.gmra.mxu1 %v656_v18  ;;  %v1105_v17 = vld [vmem:[%s3798_s5 + $0x1e0] sm:$0xff]  ;;  %v669_v18 = vmax.f32 %v566_v12, 0.0  ;;  %v1076_v12 = vld [vmem:[%s3798_s5 + $0xf8] sm:$0xff] }
  0xcb   : > { %1338 = vmatpush.msra.mxu1 %v1105_v17  ;;  %v1079_v17 = vld [vmem:[%s3798_s5 + $0x110] sm:$0xff] }
  0xcc   : > { %v547_v22 = vpop.f32.mrf.mxu0  ;;  %v612_v23 = vpop.f32.mrf.mxu1 }
  0xcd   : > { %v548_v24 = vadd.f32 %v547_v22, %v2802_v57  ;;  %v613_v25 = vadd.f32 %v612_v23, %v2804_v58  ;;  %v568_v8 = vpop.f32.mrf.mxu2  ;;  %v633_v9 = vpop.f32.mrf.mxu3 }
  0xce   : > { %v569_v23 = vadd.f32 %v568_v8, %v2802_v57  ;;  %v1055_v8 = vld [vmem:[%s3798_s5 + $0x50] sm:$0xff] }
  0xcf   : > { %v657_v26 = vmax.f32 %v548_v24, 0.0  ;;  %v658_v27 = vmax.f32 %v613_v25, 0.0  ;;  %v634_v24 = vadd.f32 %v633_v9, %v2804_v58  ;;  %v1113_v25 = vld [vmem:[#allocation4 + $0x20] sm:$0xff] }
  0xd0   : > { %1155 = vmatpush.msra.mxu2 %v1113_v25  ;;  %v1081_v9 = vld [vmem:[%s3798_s5 + $0x120] sm:$0xff]  ;;  %v1074_v25 = vld [vmem:[%s3798_s5 + $0xe8] sm:$0xff] }
  0xd1   : > { %778 = vmatmul.f32.gmra.mxu2 %v657_v26  ;;  %843 = vmatmul.f32.gmra.mxu3 %v658_v27 }
  0xd2   : > { %908 = vmatmul.f32.gmra.mxu0 %v657_v26  ;;  %973 = vmatmul.f32.gmra.mxu1 %v658_v27  ;;  %v1103_v26 = vld [vmem:[%s3798_s5 + $0x1d0] sm:$0xff]  ;;  %v1114_v27 = vld [vmem:[#allocation4 + $0x28] sm:$0xff] }
  0xd3   : > { %1339 = vmatpush.msra.mxu1 %v1103_v26  ;;  %1220 = vmatpush.msra.mxu3 %v1114_v27  ;;  %v1106_v26 = vld [vmem:[%s3798_s5 + $0x1e8] sm:$0xff] }
  0xd4   : > { %v550_v30 = vpop.f32.mrf.mxu0  ;;  %v615_v31 = vpop.f32.mrf.mxu1 }
  0xd5   : > { %v551_v34 = vadd.f32 %v550_v30, %v2802_v57  ;;  %v616_v35 = vadd.f32 %v615_v31, %v2804_v58  ;;  %v571_v20 = vpop.f32.mrf.mxu2  ;;  %v636_v22 = vpop.f32.mrf.mxu3  ;;  %v1073_v30 = vld [vmem:[%s3798_s5 + $0xe0] sm:$0xff]  ;;  %v1099_v31 = vld [vmem:[%s3798_s5 + $0x1b0] sm:$0xff]  ;;  %1340 = vmatpush.msra.mxu1 %v1101_v29 }
  0xd6   : > { %1273 = vmatpush.msra.mxu0 %v1073_v30 }
  0xd7   : > { %v659_v36 = vmax.f32 %v551_v34, 0.0  ;;  %v660_v37 = vmax.f32 %v616_v35, 0.0  ;;  %v671_v34 = vmax.f32 %v569_v23, 0.0  ;;  %v672_v35 = vmax.f32 %v634_v24, 0.0  ;;  %1341 = vmatpush.msra.mxu1 %v1099_v31  ;;  %v1049_v23 = vld [vmem:[%s3798_s5 + $0x20] sm:$0xff]  ;;  %v1047_v24 = vld [vmem:[%s3798_s5 + $0x10] sm:$0xff] }
  0xd8   : > { %v1045_v31 = vld [vmem:[%s3798_s5] sm:$0xff] }
  0xd9   : > { %781 = vmatmul.f32.gmra.mxu2 %v659_v36  ;;  %846 = vmatmul.f32.gmra.mxu3 %v660_v37 }
  0xda   : > { %911 = vmatmul.f32.gmra.mxu0 %v659_v36  ;;  %976 = vmatmul.f32.gmra.mxu1 %v660_v37  ;;  %v1071_v36 = vld [vmem:[%s3798_s5 + $0xd0] sm:$0xff] }
  0xdb   : > { %1274 = vmatpush.msra.mxu0 %v1071_v36  ;;  %1342 = vmatpush.msra.mxu1 %v1097_v39  ;;  %v1072_v36 = vld [vmem:[%s3798_s5 + $0xd8] sm:$0xff] }
  0xdc   : > { %v553_v40 = vpop.f32.mrf.mxu0  ;;  %v618_v41 = vpop.f32.mrf.mxu1 }
  0xdd   : > { %v554_v42 = vadd.f32 %v553_v40, %v2802_v57  ;;  %v619_v43 = vadd.f32 %v618_v41, %v2804_v58  ;;  %v574_v37 = vpop.f32.mrf.mxu2  ;;  %v639_v38 = vpop.f32.mrf.mxu3  ;;  %v572_v40 = vadd.f32 %v571_v20, %v2802_v57  ;;  %v637_v41 = vadd.f32 %v636_v22, %v2804_v58  ;;  %v1077_v22 = vld [vmem:[%s3798_s5 + $0x100] sm:$0xff] }
  0xdf   : > { %v661_v44 = vmax.f32 %v554_v42, 0.0  ;;  %v662_v45 = vmax.f32 %v619_v43, 0.0  ;;  %v1111_v42 = vld [vmem:[#allocation4 + $0x10] sm:$0xff]  ;;  %v1069_v43 = vld [vmem:[%s3798_s5 + $0xc0] sm:$0xff]  ;;  %v673_v48 = vmax.f32 %v572_v40, 0.0  ;;  %v674_v49 = vmax.f32 %v637_v41, 0.0 }
  0xe0   : > { %1156 = vmatpush.msra.mxu2 %v1111_v42  ;;  %1275 = vmatpush.msra.mxu0 %v1069_v43  ;;  %v1070_v40 = vld [vmem:[%s3798_s5 + $0xc8] sm:$0xff] }
  0xe1   : > { %784 = vmatmul.f32.gmra.mxu2 %v661_v44  ;;  %849 = vmatmul.f32.gmra.mxu3 %v662_v45  ;;  %v1102_v41 = vld [vmem:[%s3798_s5 + $0x1c8] sm:$0xff] }
  0xe2   : > { %914 = vmatmul.f32.gmra.mxu0 %v661_v44  ;;  %979 = vmatmul.f32.gmra.mxu1 %v662_v45  ;;  %v1095_v44 = vld [vmem:[%s3798_s5 + $0x190] sm:$0xff]  ;;  %v1112_v45 = vld [vmem:[#allocation4 + $0x18] sm:$0xff] }
  0xe3   : > { %1221 = vmatpush.msra.mxu3 %v1112_v45  ;;  %1343 = vmatpush.msra.mxu1 %v1095_v44 }
  0xe4   : > { %v556_v50 = vpop.f32.mrf.mxu0  ;;  %v621_v51 = vpop.f32.mrf.mxu1  ;;  %1276 = vmatpush.msra.mxu0 %v1067_v46  ;;  %1157 = vmatpush.msra.mxu2 %v1109_v60 }
  0xe5   : > { %v557_v52 = vadd.f32 %v556_v50, %v2802_v57  ;;  %v622_v53 = vadd.f32 %v621_v51, %v2804_v58  ;;  %v1065_v50 = vld [vmem:[%s3798_s5 + $0xa0] sm:$0xff]  ;;  %1344 = vmatpush.msra.mxu1 %v1093_v47  ;;  %v1091_v51 = vld [vmem:[%s3798_s5 + $0x170] sm:$0xff]  ;;  %v642_v56 = vpop.f32.mrf.mxu3 }
  0xe6   : > { %1277 = vmatpush.msra.mxu0 %v1065_v50  ;;  %v643_v6 = vadd.f32 %v642_v56, %v2804_v58  ;;  %1402 = vmatpush.msrb.mxu2 %v1076_v12  ;;  %v1068_v50 = vld [vmem:[%s3798_s5 + $0xb8] sm:$0xff] }
  0xe7   : > { %v663_v54 = vmax.f32 %v557_v52, 0.0  ;;  %v664_v55 = vmax.f32 %v622_v53, 0.0  ;;  %v1063_v52 = vld [vmem:[%s3798_s5 + $0x90] sm:$0xff]  ;;  %v575_v53 = vadd.f32 %v574_v37, %v2802_v57  ;;  %1345 = vmatpush.msra.mxu1 %v1091_v51  ;;  %v1104_v37 = vld [vmem:[%s3798_s5 + $0x1d8] sm:$0xff] }
  0xe8   : > { %1278 = vmatpush.msra.mxu0 %v1063_v52  ;;  %v678_v16 = vmax.f32 %v643_v6, 0.0  ;;  %1403 = vmatpush.msrb.mxu2 %v1074_v25  ;;  %v1100_v51 = vld [vmem:[%s3798_s5 + $0x1b8] sm:$0xff]  ;;  %v2325_v6 = vld [vmem:[%s2577_s14 + $0x10] sm:$0xff]  ;;  %v1062_v25 = vld [vmem:[%s3798_s5 + $0x88] sm:$0xff] }
  0xe9   : > { %787 = vmatmul.f32.gmra.mxu2 %v663_v54  ;;  %852 = vmatmul.f32.gmra.mxu3 %v664_v55  ;;  %v1096_v12 = vld [vmem:[%s3798_s5 + $0x198] sm:$0xff] }
  0xea   : > { %917 = vmatmul.f32.gmra.mxu0 %v663_v54  ;;  %982 = vmatmul.f32.gmra.mxu1 %v664_v55  ;;  %v640_v54 = vadd.f32 %v639_v38, %v2804_v58  ;;  %v577_v55 = vpop.f32.mrf.mxu2 }
  0xeb   : > { %1346 = vmatpush.msra.mxu1 %v1089_v59  ;;  %1279 = vmatpush.msra.mxu0 %v1061_v61  ;;  %v578_v5 = vadd.f32 %v577_v55, %v2802_v57 }
  0xec   : > { %v559_v62 = vpop.f32.mrf.mxu0  ;;  %v624_v63 = vpop.f32.mrf.mxu1  ;;  %1404 = vmatpush.msrb.mxu2 %v1072_v36 }
  0xed   : > { %v560_v0 = vadd.f32 %v559_v62, %v2802_v57  ;;  %v625_v1 = vadd.f32 %v624_v63, %v2804_v58  ;;  %v1110_v62 = vld [vmem:[#allocation4 + $0x8] sm:$0xff]  ;;  %v1087_v63 = vld [vmem:[%s3798_s5 + $0x150] sm:$0xff]  ;;  %v677_v15 = vmax.f32 %v578_v5, 0.0 }
  0xee   : > { %1222 = vmatpush.msra.mxu3 %v1110_v62  ;;  %1347 = vmatpush.msra.mxu1 %v1087_v63  ;;  %v1066_v63 = vld [vmem:[%s3798_s5 + $0xa8] sm:$0xff] }
  0xef   : > { %v665_v2 = vmax.f32 %v560_v0, 0.0  ;;  %v666_v3 = vmax.f32 %v625_v1, 0.0  ;;  %v1059_v0 = vld [vmem:[%s3798_s5 + $0x70] sm:$0xff]  ;;  %v675_v1 = vmax.f32 %v575_v53, 0.0  ;;  %1405 = vmatpush.msrb.mxu2 %v1070_v40  ;;  %v1092_v40 = vld [vmem:[%s3798_s5 + $0x178] sm:$0xff] }
  0xf0   : > { %1280 = vmatpush.msra.mxu0 %v1059_v0  ;;  %1467 = vmatpush.msrb.mxu3 %v1108_v14  ;;  %v1098_v0 = vld [vmem:[%s3798_s5 + $0x1a8] sm:$0xff] }
  0xf1   : > { %790 = vmatmul.f32.gmra.mxu2 %v665_v2  ;;  %855 = vmatmul.f32.gmra.mxu3 %v666_v3 }
  0xf2   : > { %920 = vmatmul.f32.gmra.mxu0 %v665_v2  ;;  %985 = vmatmul.f32.gmra.mxu1 %v666_v3  ;;  %v676_v2 = vmax.f32 %v640_v54, 0.0  ;;  %v1085_v3 = vld [vmem:[%s3798_s5 + $0x140] sm:$0xff] }
  0xf3   : > { %1348 = vmatpush.msra.mxu1 %v1085_v3  ;;  %1281 = vmatpush.msra.mxu0 %v1057_v4 }
  0xf4   : > { %1468 = vmatpush.msrb.mxu3 %v1106_v26  ;;  %1406 = vmatpush.msrb.mxu2 %v1068_v50  ;;  %v1094_v26 = vld [vmem:[%s3798_s5 + $0x188] sm:$0xff] }
  0xf5   : > { %1349 = vmatpush.msra.mxu1 %v1083_v7  ;;  %1282 = vmatpush.msra.mxu0 %v1055_v8  ;;  %v2328_v50 = vld [vmem:[%s2577_s14 + $0x28] sm:$0xff] }
  0xf6   : > { %1469 = vmatpush.msrb.mxu3 %v1104_v37  ;;  %1407 = vmatpush.msrb.mxu2 %v1066_v63 }
  0xf7   : > { %1350 = vmatpush.msra.mxu1 %v1081_v9  ;;  %1283 = vmatpush.msra.mxu0 %v1053_v13 }
  0xf8   : > { %1470 = vmatpush.msrb.mxu3 %v1102_v41 }
  0xf9   : > { %793 = vmatmul.f32.gmra.mxu2 %v667_v10  ;;  %858 = vmatmul.f32.gmra.mxu3 %v668_v11 }
  0xfa   : > { %923 = vmatmul.f32.gmra.mxu0 %v667_v10  ;;  %988 = vmatmul.f32.gmra.mxu1 %v668_v11  ;;  %v580_v10 = vpop.f32.mrf.mxu2  ;;  %v645_v11 = vpop.f32.mrf.mxu3 }
  0xfb   : > { %v646_v20 = vadd.f32 %v645_v11, %v2804_v58  ;;  %1351 = vmatpush.msra.mxu1 %v1079_v17  ;;  %1471 = vmatpush.msrb.mxu3 %v1100_v51  ;;  %v1064_v11 = vld [vmem:[%s3798_s5 + $0x98] sm:$0xff] }
  0xfc   : > { %1408 = vmatpush.msrb.mxu2 %v1064_v11 }
  0xfd   : > { %v680_v28 = vmax.f32 %v646_v20, 0.0  ;;  %1352 = vmatpush.msra.mxu1 %v1077_v22  ;;  %1472 = vmatpush.msrb.mxu3 %v1098_v0 }
  0xfe   : > { %1409 = vmatpush.msrb.mxu2 %v1062_v25 }
  0xff   : > { %1473 = vmatpush.msrb.mxu3 %v1096_v12  ;;  %v1056_v12 = vld [vmem:[%s3798_s5 + $0x58] sm:$0xff] }
 0x101   : > { %796 = vmatmul.f32.gmra.mxu2 %v669_v18  ;;  %861 = vmatmul.f32.gmra.mxu3 %v670_v19 }
 0x102   : > { %926 = vmatmul.f32.gmra.mxu0 %v669_v18  ;;  %991 = vmatmul.f32.gmra.mxu1 %v670_v19  ;;  %v1051_v18 = vld [vmem:[%s3798_s5 + $0x30] sm:$0xff]  ;;  %v581_v19 = vadd.f32 %v580_v10, %v2802_v57  ;;  %v583_v29 = vpop.f32.mrf.mxu2  ;;  %v648_v30 = vpop.f32.mrf.mxu3 }
 0x103   : > { %1284 = vmatpush.msra.mxu0 %v1051_v18  ;;  %1474 = vmatpush.msrb.mxu3 %v1094_v26 }
 0x104   : > { %v679_v27 = vmax.f32 %v581_v19, 0.0  ;;  %v2326_v19 = vld [vmem:[%s2577_s14 + $0x18] sm:$0xff] }
 0x105   : > { %1285 = vmatpush.msra.mxu0 %v1049_v23  ;;  %1475 = vmatpush.msrb.mxu3 %v1092_v40 }
 0x107   : > { %1286 = vmatpush.msra.mxu0 %v1047_v24 }
 0x109   : > { %799 = vmatmul.f32.gmra.mxu2 %v671_v34  ;;  %864 = vmatmul.f32.gmra.mxu3 %v672_v35 }
 0x10a   : > { %929 = vmatmul.f32.gmra.mxu0 %v671_v34  ;;  %994 = vmatmul.f32.gmra.mxu1 %v672_v35  ;;  %v584_v34 = vadd.f32 %v583_v29, %v2802_v57  ;;  %v649_v35 = vadd.f32 %v648_v30, %v2804_v58  ;;  %v747_v57 = vld [vmem:[%s3797_s4] sm:$0x3] }
 0x10b   : > { %1287 = vmatpush.msra.mxu0 %v1045_v31  ;;  %v2955_v58 = vperm.slane %v747_v57, 1  ;;  %v2966_v45 = vperm.slane %v747_v57, 0  ;;  %v1060_v57 = vld [vmem:[%s3798_s5 + $0x78] sm:$0xff] }
 0x10c   : > { %v681_v38 = vmax.f32 %v584_v34, 0.0  ;;  %v682_v39 = vmax.f32 %v649_v35, 0.0  ;;  %v2327_v35 = vld [vmem:[%s2577_s14 + $0x20] sm:$0xff]  ;;  %1410 = vmatpush.msrb.mxu2 %v1060_v57 }
 0x111   : > { %802 = vmatmul.f32.gmra.mxu2 %v673_v48  ;;  %867 = vmatmul.f32.gmra.mxu3 %v674_v49 }
 0x112   : > { %932 = vmatmul.f32.gmra.mxu0 %v673_v48  ;;  %997 = vmatmul.f32.gmra.mxu1 %v674_v49 }
 0x119   : > { %805 = vmatmul.f32.gmra.mxu2 %v675_v1  ;;  %870 = vmatmul.f32.gmra.mxu3 %v676_v2 }
 0x11a   : > { %935 = vmatmul.f32.gmra.mxu0 %v675_v1  ;;  %1000 = vmatmul.f32.gmra.mxu1 %v676_v2 }
 0x121   : > { %808 = vmatmul.f32.gmra.mxu2 %v677_v15  ;;  %873 = vmatmul.f32.gmra.mxu3 %v678_v16 }
 0x122   : > { %938 = vmatmul.f32.gmra.mxu0 %v677_v15  ;;  %1003 = vmatmul.f32.gmra.mxu1 %v678_v16 }
 0x129   : > { %811 = vmatmul.f32.gmra.mxu2 %v679_v27  ;;  %876 = vmatmul.f32.gmra.mxu3 %v680_v28 }
 0x12a   : > { %941 = vmatmul.f32.gmra.mxu0 %v679_v27  ;;  %1006 = vmatmul.f32.gmra.mxu1 %v680_v28 }
 0x131   : > { %814 = vmatmul.f32.gmra.mxu2 %v681_v38  ;;  %879 = vmatmul.f32.gmra.mxu3 %v682_v39 }
 0x132   : > { %944 = vmatmul.f32.gmra.mxu0 %v681_v38  ;;  %1009 = vmatmul.f32.gmra.mxu1 %v682_v39 }
 0x137   : > { %v900_v42 = vpop.f32.mrf.mxu0  ;;  %v965_v43 = vpop.f32.mrf.mxu1 }
 0x138   : > { %v901_v44 = vadd.f32 %v900_v42, %v2955_v58 }
 0x139   : > { %1158 = vmatmul.f32.vlgmr.msra.gmra.mxu2 %v2580_v32  ;;  %1223 = vmatmul.f32.vlgmr.msra.gmra.mxu3 %v2580_v32 }
 0x13a   : > { %v2968_v46 = vadd.f32 %v965_v43, %v901_v44 }
 0x13c   : > { %v1014_v47 = vmax.f32 %v2968_v46, 0.0  ;;  %v770_v48 = vpop.f32.mrf.mxu2  ;;  %v835_v49 = vpop.f32.mrf.mxu3  ;;  %v1658_v46 = vld [vmem:[%s3801_s8 + $0x1c8] sm:$0xff] }
 0x13d   : > { %v771_v52 = vadd.f32 %v770_v48, %v2966_v45 }
 0x13e   : > { %1353 = vmatmul.f32.vlgmr.msra.gmra.mxu1 %v1014_v47 }
 0x13f   : > { %v2980_v32 = vadd.f32 %v835_v49, %v771_v52  ;;  %v903_v53 = vpop.f32.mrf.mxu0  ;;  %v968_v54 = vpop.f32.mrf.mxu1 }
 0x140   : > { %v904_v55 = vadd.f32 %v903_v53, %v2955_v58 }
 0x141   : > { %v1013_v56 = vmax.f32 %v2980_v32, 0.0  ;;  %1161 = vmatmul.f32.gmra.mxu2 %v2585_v33  ;;  %1226 = vmatmul.f32.gmra.mxu3 %v2585_v33 }
 0x142   : > { %v2986_v59 = vadd.f32 %v968_v54, %v904_v55  ;;  %v1058_v55 = vld [vmem:[%s3798_s5 + $0x68] sm:$0xff] }
 0x143   : > { %1288 = vmatmul.f32.vlgmr.msra.gmra.mxu0 %v1013_v56  ;;  %1411 = vmatpush.msrb.mxu2 %v1058_v55 }
 0x144   : > { %v1016_v60 = vmax.f32 %v2986_v59, 0.0  ;;  %v773_v61 = vpop.f32.mrf.mxu2  ;;  %v838_v62 = vpop.f32.mrf.mxu3  ;;  %v1656_v59 = vld [vmem:[%s3801_s8 + $0x1b8] sm:$0xff] }
 0x145   : > { %v774_v33 = vadd.f32 %v773_v61, %v2966_v45  ;;  %v1090_v61 = vld [vmem:[%s3798_s5 + $0x168] sm:$0xff]  ;;  %1412 = vmatpush.msrb.mxu2 %v1056_v12 }
 0x146   : > { %1356 = vmatmul.f32.gmra.mxu1 %v1016_v60  ;;  %1476 = vmatpush.msrb.mxu3 %v1090_v61 }
 0x147   : > { %v3000_v1 = vadd.f32 %v838_v62, %v774_v33  ;;  %v906_v2 = vpop.f32.mrf.mxu0  ;;  %v971_v3 = vpop.f32.mrf.mxu1 }
 0x148   : > { %v907_v4 = vadd.f32 %v906_v2, %v2955_v58 }
 0x149   : > { %v1015_v5 = vmax.f32 %v3000_v1, 0.0  ;;  %1164 = vmatmul.f32.gmra.mxu2 %v2325_v6  ;;  %1229 = vmatmul.f32.gmra.mxu3 %v2325_v6 }
 0x14a   : > { %v3005_v7 = vadd.f32 %v971_v3, %v907_v4  ;;  %v2329_v4 = vld [vmem:[%s2577_s14 + $0x30] sm:$0xff] }
 0x14b   : > { %1291 = vmatmul.f32.gmra.mxu0 %v1015_v5 }
 0x14c   : > { %v1018_v8 = vmax.f32 %v3005_v7, 0.0  ;;  %v776_v9 = vpop.f32.mrf.mxu2  ;;  %v841_v10 = vpop.f32.mrf.mxu3  ;;  %v1654_v7 = vld [vmem:[%s3801_s8 + $0x1a8] sm:$0xff] }
 0x14d   : > { %v777_v13 = vadd.f32 %v776_v9, %v2966_v45 }
 0x14e   : > { %1359 = vmatmul.f32.gmra.mxu1 %v1018_v8 }
 0x14f   : > { %v3019_v14 = vadd.f32 %v841_v10, %v777_v13  ;;  %v909_v15 = vpop.f32.mrf.mxu0  ;;  %v974_v16 = vpop.f32.mrf.mxu1  ;;  %v1088_v13 = vld [vmem:[%s3798_s5 + $0x158] sm:$0xff] }
 0x150   : > { %v910_v17 = vadd.f32 %v909_v15, %v2955_v58  ;;  %1477 = vmatpush.msrb.mxu3 %v1088_v13 }
 0x151   : > { %v1017_v18 = vmax.f32 %v3019_v14, 0.0  ;;  %1167 = vmatmul.f32.gmra.mxu2 %v2326_v19  ;;  %1232 = vmatmul.f32.gmra.mxu3 %v2326_v19 }
 0x152   : > { %v3024_v20 = vadd.f32 %v974_v16, %v910_v17 }
 0x153   : > { %1294 = vmatmul.f32.gmra.mxu0 %v1017_v18 }
 0x154   : > { %v1020_v22 = vmax.f32 %v3024_v20, 0.0  ;;  %v779_v23 = vpop.f32.mrf.mxu2  ;;  %v844_v24 = vpop.f32.mrf.mxu3  ;;  %v1652_v20 = vld [vmem:[%s3801_s8 + $0x198] sm:$0xff] }
 0x155   : > { %v780_v27 = vadd.f32 %v779_v23, %v2966_v45 }
 0x156   : > { %1362 = vmatmul.f32.gmra.mxu1 %v1020_v22 }
 0x157   : > { %v3038_v28 = vadd.f32 %v844_v24, %v780_v27  ;;  %v912_v29 = vpop.f32.mrf.mxu0  ;;  %v977_v30 = vpop.f32.mrf.mxu1 }
 0x158   : > { %v913_v31 = vadd.f32 %v912_v29, %v2955_v58 }
 0x159   : > { %v1019_v34 = vmax.f32 %v3038_v28, 0.0  ;;  %1170 = vmatmul.f32.gmra.mxu2 %v2327_v35  ;;  %1235 = vmatmul.f32.gmra.mxu3 %v2327_v35 }
 0x15a   : > { %v3043_v36 = vadd.f32 %v977_v30, %v913_v31  ;;  %v1054_v30 = vld [vmem:[%s3798_s5 + $0x48] sm:$0xff] }
 0x15b   : > { %1297 = vmatmul.f32.gmra.mxu0 %v1019_v34  ;;  %v1086_v31 = vld [vmem:[%s3798_s5 + $0x148] sm:$0xff]  ;;  %1413 = vmatpush.msrb.mxu2 %v1054_v30 }
 0x15c   : > { %v1022_v37 = vmax.f32 %v3043_v36, 0.0  ;;  %v782_v38 = vpop.f32.mrf.mxu2  ;;  %v847_v39 = vpop.f32.mrf.mxu3  ;;  %1478 = vmatpush.msrb.mxu3 %v1086_v31  ;;  %v1650_v36 = vld [vmem:[%s3801_s8 + $0x188] sm:$0xff] }
 0x15d   : > { %v783_v41 = vadd.f32 %v782_v38, %v2966_v45 }
 0x15e   : > { %1365 = vmatmul.f32.gmra.mxu1 %v1022_v37 }
 0x15f   : > { %v3057_v42 = vadd.f32 %v847_v39, %v783_v41  ;;  %v915_v43 = vpop.f32.mrf.mxu0  ;;  %v980_v44 = vpop.f32.mrf.mxu1  ;;  %v2330_v41 = vld [vmem:[%s2577_s14 + $0x40] sm:$0xff] }
 0x160   : > { %v916_v48 = vadd.f32 %v915_v43, %v2955_v58 }
 0x161   : > { %v1021_v49 = vmax.f32 %v3057_v42, 0.0  ;;  %1173 = vmatmul.f32.gmra.mxu2 %v2328_v50  ;;  %1238 = vmatmul.f32.gmra.mxu3 %v2328_v50 }
 0x162   : > { %v3062_v51 = vadd.f32 %v980_v44, %v916_v48 }
 0x163   : > { %1300 = vmatmul.f32.gmra.mxu0 %v1021_v49 }
 0x164   : > { %v1024_v52 = vmax.f32 %v3062_v51, 0.0  ;;  %v785_v53 = vpop.f32.mrf.mxu2  ;;  %v850_v54 = vpop.f32.mrf.mxu3  ;;  %v1648_v51 = vld [vmem:[%s3801_s8 + $0x178] sm:$0xff] }
 0x165   : > { %v786_v62 = vadd.f32 %v785_v53, %v2966_v45  ;;  %v1052_v53 = vld [vmem:[%s3798_s5 + $0x38] sm:$0xff] }
 0x166   : > { %1368 = vmatmul.f32.gmra.mxu1 %v1024_v52  ;;  %1414 = vmatpush.msrb.mxu2 %v1052_v53  ;;  %v1080_v53 = vld [vmem:[%s3798_s5 + $0x118] sm:$0xff] }
 0x167   : > { %v3076_v63 = vadd.f32 %v850_v54, %v786_v62  ;;  %v918_v0 = vpop.f32.mrf.mxu0  ;;  %v983_v33 = vpop.f32.mrf.mxu1  ;;  %v1084_v54 = vld [vmem:[%s3798_s5 + $0x138] sm:$0xff] }
 0x168   : > { %v919_v2 = vadd.f32 %v918_v0, %v2955_v58  ;;  %1479 = vmatpush.msrb.mxu3 %v1084_v54  ;;  %v1629_v54 = vld [vmem:[%s3801_s8 + $0xe0] sm:$0xff] }
 0x169   : > { %v1023_v3 = vmax.f32 %v3076_v63, 0.0  ;;  %1176 = vmatmul.f32.gmra.mxu2 %v2329_v4  ;;  %1241 = vmatmul.f32.gmra.mxu3 %v2329_v4  ;;  %v2331_v4 = vld [vmem:[%s2577_s14 + $0x48] sm:$0xff] }
 0x16a   : > { %v3081_v6 = vadd.f32 %v983_v33, %v919_v2 }
 0x16b   : > { %1303 = vmatmul.f32.gmra.mxu0 %v1023_v3 }
 0x16c   : > { %v1026_v9 = vmax.f32 %v3081_v6, 0.0  ;;  %v788_v10 = vpop.f32.mrf.mxu2  ;;  %v853_v11 = vpop.f32.mrf.mxu3  ;;  %v1646_v6 = vld [vmem:[%s3801_s8 + $0x168] sm:$0xff] }
 0x16d   : > { %v789_v15 = vadd.f32 %v788_v10, %v2966_v45 }
 0x16e   : > { %1371 = vmatmul.f32.gmra.mxu1 %v1026_v9 }
 0x16f   : > { %v3095_v16 = vadd.f32 %v853_v11, %v789_v15  ;;  %v921_v17 = vpop.f32.mrf.mxu0  ;;  %v986_v19 = vpop.f32.mrf.mxu1  ;;  %v1050_v15 = vld [vmem:[%s3798_s5 + $0x28] sm:$0xff] }
 0x170   : > { %v922_v23 = vadd.f32 %v921_v17, %v2955_v58  ;;  %v1082_v17 = vld [vmem:[%s3798_s5 + $0x128] sm:$0xff]  ;;  %1415 = vmatpush.msrb.mxu2 %v1050_v15 }
 0x171   : > { %v1025_v24 = vmax.f32 %v3095_v16, 0.0  ;;  %1179 = vmatmul.f32.gmra.mxu2 %v2725_v21  ;;  %1244 = vmatmul.f32.gmra.mxu3 %v2725_v21 }
 0x172   : > { %v3101_v25 = vadd.f32 %v986_v19, %v922_v23  ;;  %1480 = vmatpush.msrb.mxu3 %v1082_v17  ;;  %v2333_v17 = vld [vmem:[%s2577_s14 + $0x58] sm:$0xff] }
 0x173   : > { %1306 = vmatmul.f32.gmra.mxu0 %v1025_v24 }
 0x174   : > { %v1028_v26 = vmax.f32 %v3101_v25, 0.0  ;;  %v791_v27 = vpop.f32.mrf.mxu2  ;;  %v856_v29 = vpop.f32.mrf.mxu3  ;;  %1481 = vmatpush.msrb.mxu3 %v1080_v53  ;;  %v1619_v53 = vld [vmem:[%s3801_s8 + $0x90] sm:$0xff]  ;;  %v1644_v25 = vld [vmem:[%s3801_s8 + $0x158] sm:$0xff] }
 0x175   : > { %v792_v21 = vadd.f32 %v791_v27, %v2966_v45 }
 0x176   : > { %1374 = vmatmul.f32.gmra.mxu1 %v1028_v26 }
 0x177   : > { %v3115_v35 = vadd.f32 %v856_v29, %v792_v21  ;;  %v924_v38 = vpop.f32.mrf.mxu0  ;;  %v989_v39 = vpop.f32.mrf.mxu1  ;;  %v2332_v21 = vld [vmem:[%s2577_s14 + $0x50] sm:$0xff] }
 0x178   : > { %v925_v57 = vadd.f32 %v924_v38, %v2955_v58 }
 0x179   : > { %v1027_v40 = vmax.f32 %v3115_v35, 0.0  ;;  %1182 = vmatmul.f32.gmra.mxu2 %v2330_v41  ;;  %1247 = vmatmul.f32.gmra.mxu3 %v2330_v41 }
 0x17a   : > { %v3120_v43 = vadd.f32 %v989_v39, %v925_v57  ;;  %v1631_v39 = vld [vmem:[%s3801_s8 + $0xf0] sm:$0xff] }
 0x17b   : > { %1309 = vmatmul.f32.gmra.mxu0 %v1027_v40 }
 0x17c   : > { %v1030_v44 = vmax.f32 %v3120_v43, 0.0  ;;  %v794_v48 = vpop.f32.mrf.mxu2  ;;  %v859_v50 = vpop.f32.mrf.mxu3  ;;  %1671 = vmatpush.msrb.mxu0 %v1631_v39  ;;  %v1046_v39 = vld [vmem:[%s3798_s5 + $0x8] sm:$0xff] }
 0x17d   : > { %v795_v55 = vadd.f32 %v794_v48, %v2966_v45  ;;  %v1642_v43 = vld [vmem:[%s3801_s8 + $0x148] sm:$0xff] }
 0x17e   : > { %1377 = vmatmul.f32.gmra.mxu1 %v1030_v44  ;;  %1672 = vmatpush.msrb.mxu0 %v1629_v54 }
 0x17f   : > { %v3134_v61 = vadd.f32 %v859_v50, %v795_v55  ;;  %v927_v62 = vpop.f32.mrf.mxu0  ;;  %v992_v0 = vpop.f32.mrf.mxu1  ;;  %v1048_v50 = vld [vmem:[%s3798_s5 + $0x18] sm:$0xff] }
 0x180   : > { %v928_v33 = vadd.f32 %v927_v62, %v2955_v58  ;;  %1416 = vmatpush.msrb.mxu2 %v1048_v50  ;;  %v1627_v62 = vld [vmem:[%s3801_s8 + $0xd0] sm:$0xff] }
 0x181   : > { %v1029_v2 = vmax.f32 %v3134_v61, 0.0  ;;  %1185 = vmatmul.f32.gmra.mxu2 %v2331_v4  ;;  %1250 = vmatmul.f32.gmra.mxu3 %v2331_v4 }
 0x182   : > { %v3139_v10 = vadd.f32 %v992_v0, %v928_v33  ;;  %1673 = vmatpush.msrb.mxu0 %v1627_v62  ;;  %1417 = vmatpush.msrb.mxu2 %v1046_v39 }
 0x183   : > { %1312 = vmatmul.f32.gmra.mxu0 %v1029_v2 }
 0x184   : > { %v1032_v11 = vmax.f32 %v3139_v10, 0.0  ;;  %v797_v12 = vpop.f32.mrf.mxu2  ;;  %v862_v13 = vpop.f32.mrf.mxu3  ;;  %v1640_v10 = vld [vmem:[%s3801_s8 + $0x138] sm:$0xff] }
 0x185   : > { %v798_v19 = vadd.f32 %v797_v12, %v2966_v45 }
 0x186   : > { %1380 = vmatmul.f32.gmra.mxu1 %v1032_v11 }
 0x187   : > { %v3153_v23 = vadd.f32 %v862_v13, %v798_v19  ;;  %v930_v27 = vpop.f32.mrf.mxu0  ;;  %v995_v29 = vpop.f32.mrf.mxu1  ;;  %v1625_v13 = vld [vmem:[%s3801_s8 + $0xc0] sm:$0xff] }
 0x188   : > { %v931_v30 = vadd.f32 %v930_v27, %v2955_v58  ;;  %1674 = vmatpush.msrb.mxu0 %v1625_v13  ;;  %v1623_v27 = vld [vmem:[%s3801_s8 + $0xb0] sm:$0xff]  ;;  %v2334_v13 = vld [vmem:[%s2577_s14 + $0x60] sm:$0xff] }
 0x189   : > { %v1031_v31 = vmax.f32 %v3153_v23, 0.0  ;;  %1188 = vmatmul.f32.gmra.mxu2 %v2332_v21  ;;  %1253 = vmatmul.f32.gmra.mxu3 %v2332_v21 }
 0x18a   : > { %v3158_v38 = vadd.f32 %v995_v29, %v931_v30  ;;  %1675 = vmatpush.msrb.mxu0 %v1623_v27  ;;  %v1615_v27 = vld [vmem:[%s3801_s8 + $0x70] sm:$0xff] }
 0x18b   : > { %1315 = vmatmul.f32.gmra.mxu0 %v1031_v31 }
 0x18c   : > { %v3813_v57 = vmax.f32 %v3158_v38, 0.0  ;;  %v800_v41 = vpop.f32.mrf.mxu2  ;;  %v865_v48 = vpop.f32.mrf.mxu3 }
 0x18d   : > { %v801_v55 = vadd.f32 %v800_v41, %v2966_v45  ;;  %v1078_v41 = vld [vmem:[%s3798_s5 + $0x108] sm:$0xff] }
 0x18e   : > { %1383 = vmatmul.f32.gmra.mxu1 %v3813_v57  ;;  %1482 = vmatpush.msrb.mxu3 %v1078_v41  ;;  %v1613_v41 = vld [vmem:[%s3801_s8 + $0x60] sm:$0xff] }
 0x18f   : > { %v3181_v0 = vadd.f32 %v865_v48, %v801_v55  ;;  %v933_v33 = vpop.f32.mrf.mxu0  ;;  %v998_v4 = vpop.f32.mrf.mxu1  ;;  %v1621_v48 = vld [vmem:[%s3801_s8 + $0xa0] sm:$0xff] }
 0x190   : > { %v934_v12 = vadd.f32 %v933_v33, %v2955_v58  ;;  %1676 = vmatpush.msrb.mxu0 %v1621_v48 }
 0x191   : > { %v3814_v15 = vmax.f32 %v3181_v0, 0.0  ;;  %1191 = vmatmul.f32.gmra.mxu2 %v2333_v17  ;;  %1256 = vmatmul.f32.gmra.mxu3 %v2333_v17 }
 0x192   : > { %v3189_v19 = vadd.f32 %v998_v4, %v934_v12  ;;  %1677 = vmatpush.msrb.mxu0 %v1619_v53  ;;  %v1617_v4 = vld [vmem:[%s3801_s8 + $0x80] sm:$0xff] }
 0x193   : > { %1318 = vmatmul.f32.gmra.mxu0 %v3814_v15 }
 0x194   : > { %v3810_v29 = vmax.f32 %v3189_v19, 0.0  ;;  %v803_v30 = vpop.f32.mrf.mxu2  ;;  %v868_v21 = vpop.f32.mrf.mxu3  ;;  %1678 = vmatpush.msrb.mxu0 %v1617_v4  ;;  %v1609_v4 = vld [vmem:[%s3801_s8 + $0x40] sm:$0xff] }
 0x195   : > { %v804_v50 = vadd.f32 %v803_v30, %v2966_v45 }
 0x196   : > { %1386 = vmatmul.f32.gmra.mxu1 %v3810_v29  ;;  %1679 = vmatpush.msrb.mxu0 %v1615_v27  ;;  %v2335_v27 = vld [vmem:[%s2577_s14 + $0x68] sm:$0xff] }
 0x197   : > { %v3212_v54 = vadd.f32 %v868_v21, %v804_v50  ;;  %v936_v55 = vpop.f32.mrf.mxu0  ;;  %v1001_v62 = vpop.f32.mrf.mxu1  ;;  %v1611_v50 = vld [vmem:[%s3801_s8 + $0x50] sm:$0xff] }
 0x198   : > { %v937_v33 = vadd.f32 %v936_v55, %v2955_v58  ;;  %1680 = vmatpush.msrb.mxu0 %v1613_v41 }
 0x199   : > { %v3812_v12 = vmax.f32 %v3212_v54, 0.0  ;;  %1194 = vmatmul.f32.gmra.mxu2 %v2334_v13  ;;  %1259 = vmatmul.f32.gmra.mxu3 %v2334_v13 }
 0x19a   : > { %v3220_v17 = vadd.f32 %v1001_v62, %v937_v33  ;;  %1681 = vmatpush.msrb.mxu0 %v1611_v50 }
 0x19b   : > { %1321 = vmatmul.f32.gmra.mxu0 %v3812_v12 }
 0x19c   : > { %v3807_v30 = vmax.f32 %v3220_v17, 0.0  ;;  %v806_v21 = vpop.f32.mrf.mxu2  ;;  %v871_v39 = vpop.f32.mrf.mxu3  ;;  %1682 = vmatpush.msrb.mxu0 %v1609_v4 }
 0x19d   : > { %v807_v48 = vadd.f32 %v806_v21, %v2966_v45 }
 0x19e   : > { %1389 = vmatmul.f32.gmra.mxu1 %v3807_v30  ;;  %v1632_v30 = vld [vmem:[%s3801_s8 + $0xf8] sm:$0xff] }
 0x19f   : > { %v3237_v53 = vadd.f32 %v871_v39, %v807_v48  ;;  %v939_v55 = vpop.f32.mrf.mxu0  ;;  %v1004_v62 = vpop.f32.mrf.mxu1  ;;  %v1607_v39 = vld [vmem:[%s3801_s8 + $0x30] sm:$0xff]  ;;  %1801 = vmatpush.msra.mxu2 %v1632_v30 }
 0x1a0   : > { %v940_v33 = vadd.f32 %v939_v55, %v2955_v58  ;;  %1683 = vmatpush.msrb.mxu0 %v1607_v39  ;;  %v1605_v55 = vld [vmem:[%s3801_s8 + $0x20] sm:$0xff]  ;;  %v1664_v39 = vld [vmem:[%s3801_s8 + $0x1f8] sm:$0xff]  ;;  %v1663_v30 = vld [vmem:[%s3801_s8 + $0x1f0] sm:$0xff] }
 0x1a1   : > { %v3808_v13 = vmax.f32 %v3237_v53, 0.0  ;;  %1197 = vmatmul.f32.gmra.mxu2 %v2335_v27  ;;  %1262 = vmatmul.f32.gmra.mxu3 %v2335_v27 }
 0x1a2   : > { %v3245_v21 = vadd.f32 %v1004_v62, %v940_v33  ;;  %1684 = vmatpush.msrb.mxu0 %v1605_v55  ;;  %1866 = vmatpush.msra.mxu3 %v1664_v39  ;;  %v2336_v55 = vld [vmem:[%s2577_s14 + $0x70] sm:$0xff] }
 0x1a3   : > { %1324 = vmatmul.f32.gmra.mxu0 %v3808_v13  ;;  %1736 = vmatpush.msrb.mxu1 %v1663_v30  ;;  %v2337_v30 = vld [vmem:[%s2577_s14 + $0x78] sm:$0xff]  ;;  %s3757_s14 = scalar_lea.vmem %s3805_s12, %s2244_s26 }
 0x1a4   : > { %v3809_v41 = vmax.f32 %v3245_v21, 0.0  ;;  %v809_v48 = vpop.f32.mrf.mxu2  ;;  %v874_v50 = vpop.f32.mrf.mxu3 }
 0x1a5   : > { %v810_v62 = vadd.f32 %v809_v48, %v2966_v45  ;;  %v1603_v48 = vld [vmem:[%s3801_s8 + $0x10] sm:$0xff] }
 0x1a6   : > { %1392 = vmatmul.f32.gmra.mxu1 %v3809_v41  ;;  %1685 = vmatpush.msrb.mxu0 %v1603_v48 }
 0x1a7   : > { %v3259_v33 = vadd.f32 %v874_v50, %v810_v62  ;;  %v942_v4 = vpop.f32.mrf.mxu0  ;;  %v1007_v27 = vpop.f32.mrf.mxu1  ;;  %v1601_v62 = vld [vmem:[%s3801_s8] sm:$0xff] }
 0x1a8   : > { %v943_v13 = vadd.f32 %v942_v4, %v2955_v58  ;;  %v1630_v4 = vld [vmem:[%s3801_s8 + $0xe8] sm:$0xff]  ;;  %1686 = vmatpush.msrb.mxu0 %v1601_v62 }
 0x1a9   : > { %v3811_v50 = vmax.f32 %v3259_v33, 0.0  ;;  %1200 = vmatmul.f32.gmra.mxu2 %v2336_v55  ;;  %1265 = vmatmul.f32.gmra.mxu3 %v2336_v55 }
 0x1aa   : > { %v3276_v41 = vadd.f32 %v1007_v27, %v943_v13  ;;  %v1662_v13 = vld [vmem:[%s3801_s8 + $0x1e8] sm:$0xff]  ;;  %1802 = vmatpush.msra.mxu2 %v1630_v4  ;;  %v1661_v4 = vld [vmem:[%s3801_s8 + $0x1e0] sm:$0xff] }
 0x1ab   : > { %1327 = vmatmul.f32.gmra.mxu0 %v3811_v50  ;;  %1867 = vmatpush.msra.mxu3 %v1662_v13 }
 0x1ac   : > { %v1042_v39 = vmax.f32 %v3276_v41, 0.0  ;;  %v812_v55 = vpop.f32.mrf.mxu2  ;;  %v877_v29 = vpop.f32.mrf.mxu3  ;;  %1737 = vmatpush.msrb.mxu1 %v1661_v4  ;;  %v1626_v4 = vld [vmem:[%s3801_s8 + $0xc8] sm:$0xff]  ;;  %v1994_v41 = vld [vmem:[#allocation6 + $0xf8] sm:$0xff] }
 0x1ad   : > { %v813_v27 = vadd.f32 %v812_v55, %v2966_v45 }
 0x1ae   : > { %1395 = vmatmul.f32.gmra.mxu1 %v1042_v39 }
 0x1af   : > { %v3293_v48 = vadd.f32 %v877_v29, %v813_v27  ;;  %v945_v50 = vpop.f32.mrf.mxu0  ;;  %v1010_v12 = vpop.f32.mrf.mxu1  ;;  %v1628_v29 = vld [vmem:[%s3801_s8 + $0xd8] sm:$0xff] }
 0x1b0   : > { %v946_v57 = vadd.f32 %v945_v50, %v2955_v58  ;;  %1803 = vmatpush.msra.mxu2 %v1628_v29 }
 0x1b1   : > { %v1041_v62 = vmax.f32 %v3293_v48, 0.0  ;;  %1203 = vmatmul.f32.gmra.mxu2 %v2337_v30  ;;  %1268 = vmatmul.f32.gmra.mxu3 %v2337_v30 }
 0x1b2   : > { %v3298_v15 = vadd.f32 %v1010_v12, %v946_v57  ;;  %v1660_v57 = vld [vmem:[%s3801_s8 + $0x1d8] sm:$0xff]  ;;  %1804 = vmatpush.msra.mxu2 %v1626_v4 }
 0x1b3   : > { %1330 = vmatmul.f32.gmra.mxu0 %v1041_v62  ;;  %1868 = vmatpush.msra.mxu3 %v1660_v57  ;;  %v1624_v4 = vld [vmem:[%s3801_s8 + $0xb8] sm:$0xff] }
 0x1b4   : > { %v1044_v58 = vmax.f32 %v3298_v15, 0.0  ;;  %v815_v50 = vpop.f32.mrf.mxu2  ;;  %v880_v55 = vpop.f32.mrf.mxu3  ;;  %1805 = vmatpush.msra.mxu2 %v1624_v4  ;;  %v1993_v15 = vld [vmem:[#allocation6 + $0xf0] sm:$0xff] }
 0x1b5   : > { %v816_v12 = vadd.f32 %v815_v50, %v2966_v45  ;;  %v1659_v45 = vld [vmem:[%s3801_s8 + $0x1d0] sm:$0xff]  ;;  %1869 = vmatpush.msra.mxu3 %v1658_v46 }
 0x1b6   : > { %1398 = vmatmul.f32.gmra.mxu1 %v1044_v58 }
 0x1b7   : > { %v3315_v13 = vadd.f32 %v880_v55, %v816_v12  ;;  %1738 = vmatpush.msrb.mxu1 %v1659_v45  ;;  %v1657_v45 = vld [vmem:[%s3801_s8 + $0x1c0] sm:$0xff]  ;;  %1870 = vmatpush.msra.mxu3 %v1656_v59 }
 0x1b9   : > { %v1043_v27 = vmax.f32 %v3315_v13, 0.0  ;;  %1418 = vmatmul.f32.vlgmr.msrb.gmra.mxu2 %v1013_v56  ;;  %1483 = vmatmul.f32.vlgmr.msrb.gmra.mxu3 %v1014_v47  ;;  %v3338_v47 = vld [vmem:[%s3800_s7] sm:$0x3] }
 0x1ba   : > { %v3341_v55 = vperm.slane %v3338_v47, 0  ;;  %1739 = vmatpush.msrb.mxu1 %v1657_v45  ;;  %v1622_v45 = vld [vmem:[%s3801_s8 + $0xa8] sm:$0xff]  ;;  %1871 = vmatpush.msra.mxu3 %v1654_v7 }
 0x1bb   : > { %v1354_v30 = vpop.f32.mrf.mxu1  ;;  %1333 = vmatmul.f32.gmra.mxu0 %v1043_v27  ;;  %1806 = vmatpush.msra.mxu2 %v1622_v45 }
 0x1bc   : > { %v1159_v29 = vpop.f32.mrf.mxu2  ;;  %v3330_v50 = vpop.f32.mrf.mxu3  ;;  %1872 = vmatpush.msra.mxu3 %v1652_v20  ;;  %v1649_v20 = vld [vmem:[%s3801_s8 + $0x180] sm:$0xff] }
 0x1be   : > { %1873 = vmatpush.msra.mxu3 %v1650_v36  ;;  %v1614_v36 = vld [vmem:[%s3801_s8 + $0x68] sm:$0xff] }
 0x1c0   : > { %v1289_v32 = vpop.f32.mrf.mxu0  ;;  %1874 = vmatpush.msra.mxu3 %v1648_v51 }
 0x1c1   : > { %v1290_v56 = vadd.f32 %v1289_v32, %v1159_v29  ;;  %1421 = vmatmul.f32.gmra.mxu2 %v1015_v5  ;;  %1486 = vmatmul.f32.gmra.mxu3 %v1016_v60 }
 0x1c2   : > { %1875 = vmatpush.msra.mxu3 %v1646_v6 }
 0x1c3   : > { %v1355_v57 = vadd.f32 %v1354_v30, %v1290_v56  ;;  %v1357_v12 = vpop.f32.mrf.mxu1 }
 0x1c4   : > { %v1162_v29 = vpop.f32.mrf.mxu2  ;;  %v3353_v46 = vpop.f32.mrf.mxu3  ;;  %1876 = vmatpush.msra.mxu3 %v1644_v25 }
 0x1c5   : > { %v3359_v60 = vadd.f32 %v3341_v55, %v1355_v57  ;;  %v1655_v57 = vld [vmem:[%s3801_s8 + $0x1b0] sm:$0xff] }
 0x1c6   : > { %1740 = vmatpush.msrb.mxu1 %v1655_v57  ;;  %1877 = vmatpush.msra.mxu3 %v1642_v43 }
 0x1c7   : > { %v1569_v1 = vmax.f32 %v3359_v60, 0.0 }
 0x1c8   : > { %v1292_v5 = vpop.f32.mrf.mxu0  ;;  %1878 = vmatpush.msra.mxu3 %v1640_v10  ;;  %v1637_v10 = vld [vmem:[%s3801_s8 + $0x120] sm:$0xff] }
 0x1c9   : > { %v1293_v30 = vadd.f32 %v1292_v5, %v1162_v29  ;;  %1424 = vmatmul.f32.gmra.mxu2 %v1017_v18  ;;  %1489 = vmatmul.f32.gmra.mxu3 %v1018_v8 }
 0x1ca   : > { %1687 = vmatmul.f32.vlgmr.msrb.gmra.mxu0 %v1569_v1 }
 0x1cb   : > { %v1358_v32 = vadd.f32 %v1357_v12, %v1293_v30  ;;  %v1360_v56 = vpop.f32.mrf.mxu1  ;;  %v1653_v30 = vld [vmem:[%s3801_s8 + $0x1a0] sm:$0xff] }
 0x1cc   : > { %v1165_v4 = vpop.f32.mrf.mxu2  ;;  %v3374_v29 = vpop.f32.mrf.mxu3  ;;  %1741 = vmatpush.msrb.mxu1 %v1653_v30 }
 0x1cd   : > { %v3380_v8 = vadd.f32 %v3341_v55, %v1358_v32  ;;  %v1620_v32 = vld [vmem:[%s3801_s8 + $0x98] sm:$0xff] }
 0x1ce   : > { %1807 = vmatpush.msra.mxu2 %v1620_v32 }
 0x1cf   : > { %v1571_v14 = vmax.f32 %v3380_v8, 0.0  ;;  %v1991_v8 = vld [vmem:[#allocation6 + $0xe0] sm:$0xff] }
 0x1d0   : > { %v1295_v18 = vpop.f32.mrf.mxu0 }
 0x1d1   : > { %v1296_v12 = vadd.f32 %v1295_v18, %v1165_v4  ;;  %1427 = vmatmul.f32.gmra.mxu2 %v1019_v34  ;;  %1492 = vmatmul.f32.gmra.mxu3 %v1020_v22  ;;  %v1651_v18 = vld [vmem:[%s3801_s8 + $0x190] sm:$0xff] }
 0x1d2   : > { %1690 = vmatmul.f32.gmra.mxu0 %v1571_v14  ;;  %1742 = vmatpush.msrb.mxu1 %v1651_v18 }
 0x1d3   : > { %v1361_v59 = vadd.f32 %v1360_v56, %v1296_v12  ;;  %v1363_v5 = vpop.f32.mrf.mxu1  ;;  %v1618_v12 = vld [vmem:[%s3801_s8 + $0x88] sm:$0xff] }
 0x1d4   : > { %v1168_v57 = vpop.f32.mrf.mxu2  ;;  %v3395_v45 = vpop.f32.mrf.mxu3  ;;  %1808 = vmatpush.msra.mxu2 %v1618_v12  ;;  %1743 = vmatpush.msrb.mxu1 %v1649_v20 }
 0x1d5   : > { %v3401_v22 = vadd.f32 %v3341_v55, %v1361_v59 }
 0x1d7   : > { %v1573_v28 = vmax.f32 %v3401_v22, 0.0  ;;  %v1973_v22 = vld [vmem:[#allocation6 + $0x50] sm:$0xff] }
 0x1d8   : > { %v1298_v34 = vpop.f32.mrf.mxu0 }
 0x1d9   : > { %v1299_v56 = vadd.f32 %v1298_v34, %v1168_v57  ;;  %1430 = vmatmul.f32.gmra.mxu2 %v1021_v49  ;;  %1495 = vmatmul.f32.gmra.mxu3 %v1022_v37  ;;  %v1616_v34 = vld [vmem:[%s3801_s8 + $0x78] sm:$0xff] }
 0x1da   : > { %1693 = vmatmul.f32.gmra.mxu0 %v1573_v28  ;;  %1809 = vmatpush.msra.mxu2 %v1616_v34  ;;  %v1645_v34 = vld [vmem:[%s3801_s8 + $0x160] sm:$0xff] }
 0x1db   : > { %v1364_v4 = vadd.f32 %v1363_v5, %v1299_v56  ;;  %v1366_v7 = vpop.f32.mrf.mxu1 }
 0x1dc   : > { %v1171_v59 = vpop.f32.mrf.mxu2  ;;  %v3416_v30 = vpop.f32.mrf.mxu3  ;;  %1810 = vmatpush.msra.mxu2 %v1614_v36  ;;  %v1610_v36 = vld [vmem:[%s3801_s8 + $0x48] sm:$0xff] }
 0x1dd   : > { %v3422_v37 = vadd.f32 %v3341_v55, %v1364_v4 }
 0x1df   : > { %v1575_v42 = vmax.f32 %v3422_v37, 0.0  ;;  %v1972_v37 = vld [vmem:[#allocation6 + $0x48] sm:$0xff] }
 0x1e0   : > { %v1301_v49 = vpop.f32.mrf.mxu0 }
 0x1e1   : > { %v1302_v5 = vadd.f32 %v1301_v49, %v1171_v59  ;;  %1433 = vmatmul.f32.gmra.mxu2 %v1023_v3  ;;  %1498 = vmatmul.f32.gmra.mxu3 %v1024_v52  ;;  %v1647_v59 = vld [vmem:[%s3801_s8 + $0x170] sm:$0xff] }
 0x1e2   : > { %1696 = vmatmul.f32.gmra.mxu0 %v1575_v42  ;;  %1744 = vmatpush.msrb.mxu1 %v1647_v59  ;;  %v1643_v59 = vld [vmem:[%s3801_s8 + $0x150] sm:$0xff] }
 0x1e3   : > { %v1367_v32 = vadd.f32 %v1366_v7, %v1302_v5  ;;  %v1369_v57 = vpop.f32.mrf.mxu1 }
 0x1e4   : > { %v1174_v56 = vpop.f32.mrf.mxu2  ;;  %v3437_v4 = vpop.f32.mrf.mxu3  ;;  %1745 = vmatpush.msrb.mxu1 %v1645_v34  ;;  %v1608_v34 = vld [vmem:[%s3801_s8 + $0x38] sm:$0xff] }
 0x1e5   : > { %v3443_v52 = vadd.f32 %v3341_v55, %v1367_v32 }
 0x1e6   : > { %1746 = vmatpush.msrb.mxu1 %v1643_v59  ;;  %v1639_v59 = vld [vmem:[%s3801_s8 + $0x130] sm:$0xff] }
 0x1e7   : > { %v1577_v63 = vmax.f32 %v3443_v52, 0.0  ;;  %v1988_v52 = vld [vmem:[#allocation6 + $0xc8] sm:$0xff] }
 0x1e8   : > { %v1304_v3 = vpop.f32.mrf.mxu0 }
 0x1e9   : > { %v1305_v7 = vadd.f32 %v1304_v3, %v1174_v56  ;;  %1436 = vmatmul.f32.gmra.mxu2 %v1025_v24  ;;  %1501 = vmatmul.f32.gmra.mxu3 %v1026_v9  ;;  %v1612_v56 = vld [vmem:[%s3801_s8 + $0x58] sm:$0xff] }
 0x1ea   : > { %1699 = vmatmul.f32.gmra.mxu0 %v1577_v63  ;;  %1811 = vmatpush.msra.mxu2 %v1612_v56 }
 0x1eb   : > { %v1370_v18 = vadd.f32 %v1369_v57, %v1305_v7  ;;  %v1372_v12 = vpop.f32.mrf.mxu1 }
 0x1ec   : > { %v1177_v49 = vpop.f32.mrf.mxu2  ;;  %v3458_v5 = vpop.f32.mrf.mxu3  ;;  %1812 = vmatpush.msra.mxu2 %v1610_v36  ;;  %v1606_v36 = vld [vmem:[%s3801_s8 + $0x28] sm:$0xff] }
 0x1ed   : > { %v3464_v9 = vadd.f32 %v3341_v55, %v1370_v18 }
 0x1ee   : > { %1813 = vmatpush.msra.mxu2 %v1608_v34 }
 0x1ef   : > { %v1579_v16 = vmax.f32 %v3464_v9, 0.0  ;;  %v1987_v9 = vld [vmem:[#allocation6 + $0xc0] sm:$0xff] }
 0x1f0   : > { %v1307_v24 = vpop.f32.mrf.mxu0  ;;  %1814 = vmatpush.msra.mxu2 %v1606_v36  ;;  %v3823_v36 = vmax.f32 %v3237_v53, 0.0 }
 0x1f1   : > { %v1308_v32 = vadd.f32 %v1307_v24, %v1177_v49  ;;  %1439 = vmatmul.f32.gmra.mxu2 %v1027_v40  ;;  %1504 = vmatmul.f32.gmra.mxu3 %v1028_v26 }
 0x1f2   : > { %1702 = vmatmul.f32.gmra.mxu0 %v1579_v16 }
 0x1f3   : > { %v1373_v57 = vadd.f32 %v1372_v12, %v1308_v32  ;;  %v1375_v20 = vpop.f32.mrf.mxu1 }
 0x1f4   : > { %v1180_v51 = vpop.f32.mrf.mxu2  ;;  %v3479_v3 = vpop.f32.mrf.mxu3 }
 0x1f5   : > { %v3485_v26 = vadd.f32 %v3341_v55, %v1373_v57 }
 0x1f7   : > { %v1581_v35 = vmax.f32 %v3485_v26, 0.0  ;;  %v1986_v26 = vld [vmem:[#allocation6 + $0xb8] sm:$0xff] }
 0x1f8   : > { %v1310_v40 = vpop.f32.mrf.mxu0 }
 0x1f9   : > { %v1311_v7 = vadd.f32 %v1310_v40, %v1180_v51  ;;  %1442 = vmatmul.f32.gmra.mxu2 %v1029_v2  ;;  %1507 = vmatmul.f32.gmra.mxu3 %v1030_v44  ;;  %v3819_v40 = vmax.f32 %v3181_v0, 0.0 }
 0x1fa   : > { %1705 = vmatmul.f32.gmra.mxu0 %v1581_v35 }
 0x1fb   : > { %v1376_v18 = vadd.f32 %v1375_v20, %v1311_v7  ;;  %v1378_v12 = vpop.f32.mrf.mxu1  ;;  %v1641_v20 = vld [vmem:[%s3801_s8 + $0x140] sm:$0xff]  ;;  %v3820_v7 = vmax.f32 %v3158_v38, 0.0  ;;  %v1638_v38 = vld [vmem:[%s3801_s8 + $0x128] sm:$0xff] }
 0x1fc   : > { %v1183_v49 = vpop.f32.mrf.mxu2  ;;  %v3500_v6 = vpop.f32.mrf.mxu3  ;;  %1747 = vmatpush.msrb.mxu1 %v1641_v20  ;;  %1879 = vmatpush.msra.mxu3 %v1638_v38  ;;  %v3822_v20 = vmax.f32 %v3189_v19, 0.0  ;;  %v1636_v19 = vld [vmem:[%s3801_s8 + $0x118] sm:$0xff] }
 0x1fd   : > { %v3506_v44 = vadd.f32 %v3341_v55, %v1376_v18 }
 0x1fe   : > { %1748 = vmatpush.msrb.mxu1 %v1639_v59  ;;  %1880 = vmatpush.msra.mxu3 %v1636_v19  ;;  %v1634_v19 = vld [vmem:[%s3801_s8 + $0x108] sm:$0xff] }
 0x1ff   : > { %v1583_v61 = vmax.f32 %v3506_v44, 0.0  ;;  %v1985_v44 = vld [vmem:[#allocation6 + $0xb0] sm:$0xff] }
 0x200   : > { %v1313_v2 = vpop.f32.mrf.mxu0  ;;  %1749 = vmatpush.msrb.mxu1 %v1637_v10  ;;  %1881 = vmatpush.msra.mxu3 %v1634_v19 }
 0x201   : > { %v1314_v24 = vadd.f32 %v1313_v2, %v1183_v49  ;;  %1445 = vmatmul.f32.gmra.mxu2 %v1031_v31  ;;  %1510 = vmatmul.f32.gmra.mxu3 %v1032_v11 }
 0x202   : > { %1708 = vmatmul.f32.gmra.mxu0 %v1583_v61 }
 0x203   : > { %v1379_v32 = vadd.f32 %v1378_v12, %v1314_v24  ;;  %v1381_v57 = vpop.f32.mrf.mxu1 }
 0x204   : > { %v1186_v56 = vpop.f32.mrf.mxu2  ;;  %v3521_v51 = vpop.f32.mrf.mxu3 }
 0x205   : > { %v3527_v11 = vadd.f32 %v3341_v55, %v1379_v32 }
 0x207   : > { %v1585_v23 = vmax.f32 %v3527_v11, 0.0  ;;  %v1984_v11 = vld [vmem:[#allocation6 + $0xa8] sm:$0xff] }
 0x208   : > { %v1316_v31 = vpop.f32.mrf.mxu0 }
 0x209   : > { %v1317_v25 = vadd.f32 %v1316_v31, %v1186_v56  ;;  %1448 = vmatmul.f32.gmra.mxu2 %v3819_v40  ;;  %1513 = vmatmul.f32.gmra.mxu3 %v3820_v7  ;;  %v1604_v31 = vld [vmem:[%s3801_s8 + $0x18] sm:$0xff] }
 0x20a   : > { %1711 = vmatmul.f32.gmra.mxu0 %v1585_v23  ;;  %1815 = vmatpush.msra.mxu2 %v1604_v31  ;;  %v3825_v31 = vmax.f32 %v3259_v33, 0.0 }
 0x20b   : > { %v1382_v18 = vadd.f32 %v1381_v57, %v1317_v25  ;;  %v1384_v12 = vpop.f32.mrf.mxu1  ;;  %v3821_v57 = vmax.f32 %v3212_v54, 0.0 }
 0x20c   : > { %v1189_v49 = vpop.f32.mrf.mxu2  ;;  %v3542_v43 = vpop.f32.mrf.mxu3 }
 0x20d   : > { %v3548_v0 = vadd.f32 %v3341_v55, %v1382_v18 }
 0x20f   : > { %v1587_v2 = vmax.f32 %v3548_v0, 0.0  ;;  %v1983_v0 = vld [vmem:[#allocation6 + $0xa0] sm:$0xff] }
 0x210   : > { %v1319_v24 = vpop.f32.mrf.mxu0 }
 0x211   : > { %v1320_v32 = vadd.f32 %v1319_v24, %v1189_v49  ;;  %1451 = vmatmul.f32.gmra.mxu2 %v3821_v57  ;;  %1516 = vmatmul.f32.gmra.mxu3 %v3822_v20  ;;  %v3824_v49 = vmax.f32 %v3220_v17, 0.0 }
 0x212   : > { %1714 = vmatmul.f32.gmra.mxu0 %v1587_v2 }
 0x213   : > { %v1385_v34 = vadd.f32 %v1384_v12, %v1320_v32  ;;  %v1387_v56 = vpop.f32.mrf.mxu1  ;;  %v1602_v12 = vld [vmem:[%s3801_s8 + $0x8] sm:$0xff]  ;;  %v1635_v32 = vld [vmem:[%s3801_s8 + $0x110] sm:$0xff] }
 0x214   : > { %v1192_v25 = vpop.f32.mrf.mxu2  ;;  %v3563_v40 = vpop.f32.mrf.mxu3  ;;  %1816 = vmatpush.msra.mxu2 %v1602_v12  ;;  %1750 = vmatpush.msrb.mxu1 %v1635_v32 }
 0x215   : > { %v3569_v54 = vadd.f32 %v3341_v55, %v1385_v34 }
 0x217   : > { %v1589_v7 = vmax.f32 %v3569_v54, 0.0  ;;  %v1982_v54 = vld [vmem:[#allocation6 + $0x98] sm:$0xff] }
 0x218   : > { %v1322_v18 = vpop.f32.mrf.mxu0 }
 0x219   : > { %v1323_v59 = vadd.f32 %v1322_v18, %v1192_v25  ;;  %1454 = vmatmul.f32.gmra.mxu2 %v3823_v36  ;;  %1519 = vmatmul.f32.gmra.mxu3 %v3824_v49  ;;  %v1633_v18 = vld [vmem:[%s3801_s8 + $0x100] sm:$0xff] }
 0x21a   : > { %1717 = vmatmul.f32.gmra.mxu0 %v1589_v7  ;;  %1751 = vmatpush.msrb.mxu1 %v1633_v18 }
 0x21b   : > { %v1388_v38 = vadd.f32 %v1387_v56, %v1323_v59  ;;  %v1390_v24 = vpop.f32.mrf.mxu1  ;;  %v3826_v56 = vmax.f32 %v3245_v21, 0.0 }
 0x21c   : > { %v1195_v57 = vpop.f32.mrf.mxu2  ;;  %v3584_v20 = vpop.f32.mrf.mxu3  ;;  %2064 = vmatpush.msra.mxu1 %v1994_v41  ;;  %v1992_v41 = vld [vmem:[#allocation6 + $0xe8] sm:$0xff] }
 0x21d   : > { %v3587_v53 = vadd.f32 %v3341_v55, %v1388_v38 }
 0x21e   : > { %2065 = vmatpush.msra.mxu1 %v1993_v15 }
 0x21f   : > { %v1591_v17 = vmax.f32 %v3587_v53, 0.0  ;;  %v1981_v53 = vld [vmem:[#allocation6 + $0x90] sm:$0xff] }
 0x220   : > { %v1325_v34 = vpop.f32.mrf.mxu0  ;;  %2066 = vmatpush.msra.mxu1 %v1992_v41  ;;  %v1989_v41 = vld [vmem:[#allocation6 + $0xd0] sm:$0xff] }
 0x221   : > { %v1326_v10 = vadd.f32 %v1325_v34, %v1195_v57  ;;  %1457 = vmatmul.f32.gmra.mxu2 %v3825_v31  ;;  %1522 = vmatmul.f32.gmra.mxu3 %v3826_v56 }
 0x222   : > { %1720 = vmatmul.f32.gmra.mxu0 %v1591_v17  ;;  %2067 = vmatpush.msra.mxu1 %v1991_v8 }
 0x223   : > { %v1391_v25 = vadd.f32 %v1390_v24, %v1326_v10  ;;  %v1393_v33 = vpop.f32.mrf.mxu1  ;;  %v1978_v24 = vld [vmem:[#allocation6 + $0x78] sm:$0xff] }
 0x224   : > { %v1198_v12 = vpop.f32.mrf.mxu2  ;;  %v3602_v59 = vpop.f32.mrf.mxu3  ;;  %1999 = vmatpush.msra.mxu0 %v1978_v24 }
 0x225   : > { %v3605_v21 = vadd.f32 %v3341_v55, %v1391_v25 }
 0x227   : > { %v1593_v36 = vmax.f32 %v3605_v21, 0.0 }
 0x228   : > { %v1328_v49 = vpop.f32.mrf.mxu0 }
 0x229   : > { %v1329_v38 = vadd.f32 %v1328_v49, %v1198_v12  ;;  %1460 = vmatmul.f32.gmra.mxu2 %v1041_v62  ;;  %1525 = vmatmul.f32.gmra.mxu3 %v1042_v39  ;;  %v1977_v39 = vld [vmem:[#allocation6 + $0x70] sm:$0xff] }
 0x22a   : > { %1723 = vmatmul.f32.gmra.mxu0 %v1593_v36 }
 0x22b   : > { %v1394_v32 = vadd.f32 %v1393_v33, %v1329_v38  ;;  %v1396_v56 = vpop.f32.mrf.mxu1  ;;  %2000 = vmatpush.msra.mxu0 %v1977_v39  ;;  %v1975_v39 = vld [vmem:[#allocation6 + $0x60] sm:$0xff] }
 0x22c   : > { %v1201_v57 = vpop.f32.mrf.mxu2  ;;  %v3614_v34 = vpop.f32.mrf.mxu3 }
 0x22d   : > { %v3617_v10 = vadd.f32 %v3341_v55, %v1394_v32 }
 0x22f   : > { %v1595_v31 = vmax.f32 %v3617_v10, 0.0 }
 0x230   : > { %v1331_v48 = vpop.f32.mrf.mxu0 }
 0x231   : > { %v1332_v62 = vadd.f32 %v1331_v48, %v1201_v57  ;;  %1463 = vmatmul.f32.gmra.mxu2 %v1043_v27  ;;  %1528 = vmatmul.f32.gmra.mxu3 %v1044_v58  ;;  %v1976_v58 = vld [vmem:[#allocation6 + $0x68] sm:$0xff] }
 0x232   : > { %1726 = vmatmul.f32.gmra.mxu0 %v1595_v31 }
 0x233   : > { %v1397_v25 = vadd.f32 %v1396_v56, %v1332_v62  ;;  %v1399_v49 = vpop.f32.mrf.mxu1  ;;  %2001 = vmatpush.msra.mxu0 %v1976_v58  ;;  %v3638_v56 = vperm.slane %v3338_v47, 1 }
 0x234   : > { %v1204_v19 = vpop.f32.mrf.mxu2  ;;  %v3626_v18 = vpop.f32.mrf.mxu3 }
 0x235   : > { %v3629_v12 = vadd.f32 %v3341_v55, %v1397_v25  ;;  %2002 = vmatpush.msra.mxu0 %v1975_v39 }
 0x237   : > { %v1597_v13 = vmax.f32 %v3629_v12, 0.0 }
 0x238   : > { %v1334_v27 = vpop.f32.mrf.mxu0 }
 0x239   : > { %v1335_v33 = vadd.f32 %v1334_v27, %v1204_v19  ;;  %1817 = vmatmul.f32.vlgmr.msra.gmra.mxu2 %v1569_v1 }
 0x23a   : > { %1729 = vmatmul.f32.gmra.mxu0 %v1597_v13 }
 0x23b   : > { %v1400_v38 = vadd.f32 %v1399_v49, %v1335_v33 }
 0x23c   : > { %v1419_v24 = vpop.f32.mrf.mxu2  ;;  %v1484_v32 = vpop.f32.mrf.mxu3 }
 0x23d   : > { %v1420_v57 = vadd.f32 %v1419_v24, %v3330_v50  ;;  %v3641_v48 = vadd.f32 %v3341_v55, %v1400_v38  ;;  %v1990_v24 = vld [vmem:[#allocation6 + $0xd8] sm:$0xff] }
 0x23e   : > { %2068 = vmatpush.msra.mxu1 %v1990_v24 }
 0x23f   : > { %v1485_v60 = vadd.f32 %v1484_v32, %v1420_v57  ;;  %v1599_v1 = vmax.f32 %v3641_v48, 0.0 }
 0x240   : > { %2069 = vmatpush.msra.mxu1 %v1989_v41 }
 0x241   : > { %v1538_v62 = vadd.f32 %v3638_v56, %v1485_v60  ;;  %1820 = vmatmul.f32.gmra.mxu2 %v1571_v14  ;;  %v1974_v14 = vld [vmem:[#allocation6 + $0x58] sm:$0xff] }
 0x242   : > { %1732 = vmatmul.f32.gmra.mxu0 %v1599_v1  ;;  %2070 = vmatpush.msra.mxu1 %v1988_v52 }
 0x243   : > { %v1570_v50 = vmax.f32 %v1538_v62, 0.0  ;;  %2003 = vmatpush.msra.mxu0 %v1974_v14 }
 0x244   : > { %v1422_v47 = vpop.f32.mrf.mxu2  ;;  %v1487_v25 = vpop.f32.mrf.mxu3  ;;  %2071 = vmatpush.msra.mxu1 %v1987_v9 }
 0x245   : > { %v1423_v55 = vadd.f32 %v1422_v47, %v3353_v46  ;;  %1752 = vmatmul.f32.vlgmr.msrb.gmra.mxu1 %v1570_v50  ;;  %1882 = vmatmul.f32.vlgmr.msra.gmra.mxu3 %v1570_v50 }
 0x246   : > { %2004 = vmatpush.msra.mxu0 %v1973_v22  ;;  %2072 = vmatpush.msra.mxu1 %v1986_v26  ;;  %v1963_v26 = vld [vmem:[#allocation6] sm:$0xff] }
 0x247   : > { %v1488_v19 = vadd.f32 %v1487_v25, %v1423_v55 }
 0x248   : > { %2005 = vmatpush.msra.mxu0 %v1972_v37  ;;  %2073 = vmatpush.msra.mxu1 %v1985_v44 }
 0x249   : > { %v1540_v27 = vadd.f32 %v3638_v56, %v1488_v19  ;;  %1823 = vmatmul.f32.gmra.mxu2 %v1573_v28 }
 0x24a   : > { %2074 = vmatpush.msra.mxu1 %v1984_v11 }
 0x24b   : > { %v1572_v33 = vmax.f32 %v1540_v27, 0.0 }
 0x24c   : > { %v1425_v15 = vpop.f32.mrf.mxu2  ;;  %v1490_v58 = vpop.f32.mrf.mxu3  ;;  %2075 = vmatpush.msra.mxu1 %v1983_v0 }
 0x24d   : > { %v1426_v49 = vadd.f32 %v1425_v15, %v3374_v29  ;;  %1755 = vmatmul.f32.gmra.mxu1 %v1572_v33  ;;  %1885 = vmatmul.f32.gmra.mxu3 %v1572_v33 }
 0x24e   : > { %2076 = vmatpush.msra.mxu1 %v1982_v54 }
 0x24f   : > { %v1491_v46 = vadd.f32 %v1490_v58, %v1426_v49 }
 0x250   : > { %2077 = vmatpush.msra.mxu1 %v1981_v53 }
 0x251   : > { %v1542_v38 = vadd.f32 %v3638_v56, %v1491_v46  ;;  %1826 = vmatmul.f32.gmra.mxu2 %v1575_v42 }
 0x253   : > { %v1574_v28 = vmax.f32 %v1542_v38, 0.0 }
 0x254   : > { %v1428_v32 = vpop.f32.mrf.mxu2  ;;  %v1493_v57 = vpop.f32.mrf.mxu3 }
 0x255   : > { %v1429_v60 = vadd.f32 %v1428_v32, %v3395_v45  ;;  %1758 = vmatmul.f32.gmra.mxu1 %v1574_v28  ;;  %1888 = vmatmul.f32.gmra.mxu3 %v1574_v28 }
 0x257   : > { %v1494_v29 = vadd.f32 %v1493_v57, %v1429_v60 }
 0x259   : > { %v1544_v62 = vadd.f32 %v3638_v56, %v1494_v29  ;;  %1829 = vmatmul.f32.gmra.mxu2 %v1577_v63  ;;  %v1971_v63 = vld [vmem:[#allocation6 + $0x40] sm:$0xff] }
 0x25a   : > { %2006 = vmatpush.msra.mxu0 %v1971_v63 }
 0x25b   : > { %v1576_v42 = vmax.f32 %v1544_v62, 0.0 }
 0x25c   : > { %v1431_v39 = vpop.f32.mrf.mxu2  ;;  %v1496_v50 = vpop.f32.mrf.mxu3 }
 0x25d   : > { %v1432_v47 = vadd.f32 %v1431_v39, %v3416_v30  ;;  %1761 = vmatmul.f32.gmra.mxu1 %v1576_v42  ;;  %1891 = vmatmul.f32.gmra.mxu3 %v1576_v42 }
 0x25f   : > { %v1497_v45 = vadd.f32 %v1496_v50, %v1432_v47 }
 0x261   : > { %v1546_v25 = vadd.f32 %v3638_v56, %v1497_v45  ;;  %1832 = vmatmul.f32.gmra.mxu2 %v1579_v16  ;;  %v1970_v16 = vld [vmem:[#allocation6 + $0x38] sm:$0xff] }
 0x262   : > { %2007 = vmatpush.msra.mxu0 %v1970_v16 }
 0x263   : > { %v1578_v55 = vmax.f32 %v1546_v25, 0.0 }
 0x264   : > { %v1434_v19 = vpop.f32.mrf.mxu2  ;;  %v1499_v27 = vpop.f32.mrf.mxu3 }
 0x265   : > { %v1435_v8 = vadd.f32 %v1434_v19, %v3437_v4  ;;  %1764 = vmatmul.f32.gmra.mxu1 %v1578_v55  ;;  %1894 = vmatmul.f32.gmra.mxu3 %v1578_v55 }
 0x267   : > { %v1500_v30 = vadd.f32 %v1499_v27, %v1435_v8 }
 0x269   : > { %v1548_v14 = vadd.f32 %v3638_v56, %v1500_v30  ;;  %1835 = vmatmul.f32.gmra.mxu2 %v1581_v35  ;;  %v1969_v35 = vld [vmem:[#allocation6 + $0x30] sm:$0xff] }
 0x26a   : > { %2008 = vmatpush.msra.mxu0 %v1969_v35 }
 0x26b   : > { %v1580_v33 = vmax.f32 %v1548_v14, 0.0 }
 0x26c   : > { %v1437_v15 = vpop.f32.mrf.mxu2  ;;  %v1502_v58 = vpop.f32.mrf.mxu3 }
 0x26d   : > { %v1438_v49 = vadd.f32 %v1437_v15, %v3458_v5  ;;  %1767 = vmatmul.f32.gmra.mxu1 %v1580_v33  ;;  %1897 = vmatmul.f32.gmra.mxu3 %v1580_v33 }
 0x26f   : > { %v1503_v4 = vadd.f32 %v1502_v58, %v1438_v49  ;;  %v1688_v49 = vpop.f32.mrf.mxu0 }
 0x271   : > { %v1550_v46 = vadd.f32 %v3638_v56, %v1503_v4  ;;  %1838 = vmatmul.f32.gmra.mxu2 %v1583_v61  ;;  %v1968_v61 = vld [vmem:[#allocation6 + $0x28] sm:$0xff] }
 0x272   : > { %2009 = vmatpush.msra.mxu0 %v1968_v61 }
 0x273   : > { %v1582_v38 = vmax.f32 %v1550_v46, 0.0 }
 0x274   : > { %v1440_v24 = vpop.f32.mrf.mxu2  ;;  %v1505_v22 = vpop.f32.mrf.mxu3 }
 0x275   : > { %v1441_v28 = vadd.f32 %v1440_v24, %v3479_v3  ;;  %1770 = vmatmul.f32.gmra.mxu1 %v1582_v38  ;;  %1900 = vmatmul.f32.gmra.mxu3 %v1582_v38 }
 0x277   : > { %v1506_v5 = vadd.f32 %v1505_v22, %v1441_v28  ;;  %v1691_v22 = vpop.f32.mrf.mxu0 }
 0x279   : > { %v1552_v32 = vadd.f32 %v3638_v56, %v1506_v5  ;;  %1841 = vmatmul.f32.gmra.mxu2 %v1585_v23  ;;  %v1967_v23 = vld [vmem:[#allocation6 + $0x20] sm:$0xff] }
 0x27a   : > { %2010 = vmatpush.msra.mxu0 %v1967_v23 }
 0x27b   : > { %v1584_v57 = vmax.f32 %v1552_v32, 0.0 }
 0x27c   : > { %v1443_v60 = vpop.f32.mrf.mxu2  ;;  %v1508_v29 = vpop.f32.mrf.mxu3 }
 0x27d   : > { %v1444_v62 = vadd.f32 %v1443_v60, %v3500_v6  ;;  %1773 = vmatmul.f32.gmra.mxu1 %v1584_v57  ;;  %1903 = vmatmul.f32.gmra.mxu3 %v1584_v57 }
 0x27f   : > { %v1509_v3 = vadd.f32 %v1508_v29, %v1444_v62  ;;  %v1694_v44 = vpop.f32.mrf.mxu0 }
 0x281   : > { %v1554_v41 = vadd.f32 %v3638_v56, %v1509_v3  ;;  %1844 = vmatmul.f32.gmra.mxu2 %v1587_v2  ;;  %v1966_v2 = vld [vmem:[#allocation6 + $0x18] sm:$0xff] }
 0x282   : > { %2011 = vmatpush.msra.mxu0 %v1966_v2 }
 0x283   : > { %v1586_v37 = vmax.f32 %v1554_v41, 0.0 }
 0x284   : > { %v1446_v42 = vpop.f32.mrf.mxu2  ;;  %v1511_v39 = vpop.f32.mrf.mxu3 }
 0x285   : > { %v1447_v50 = vadd.f32 %v1446_v42, %v3521_v51  ;;  %1776 = vmatmul.f32.gmra.mxu1 %v1586_v37  ;;  %1906 = vmatmul.f32.gmra.mxu3 %v1586_v37 }
 0x287   : > { %v1512_v6 = vadd.f32 %v1511_v39, %v1447_v50  ;;  %v1697_v48 = vpop.f32.mrf.mxu0 }
 0x289   : > { %v1556_v47 = vadd.f32 %v3638_v56, %v1512_v6  ;;  %1847 = vmatmul.f32.gmra.mxu2 %v1589_v7  ;;  %v1965_v7 = vld [vmem:[#allocation6 + $0x10] sm:$0xff] }
 0x28a   : > { %2012 = vmatpush.msra.mxu0 %v1965_v7 }
 0x28b   : > { %v1588_v45 = vmax.f32 %v1556_v47, 0.0 }
 0x28c   : > { %v1449_v25 = vpop.f32.mrf.mxu2  ;;  %v1514_v55 = vpop.f32.mrf.mxu3 }
 0x28d   : > { %v1450_v52 = vadd.f32 %v1449_v25, %v3542_v43  ;;  %1779 = vmatmul.f32.gmra.mxu1 %v1588_v45  ;;  %1909 = vmatmul.f32.gmra.mxu3 %v1588_v45 }
 0x28f   : > { %v1515_v51 = vadd.f32 %v1514_v55, %v1450_v52  ;;  %v1700_v39 = vpop.f32.mrf.mxu0 }
 0x291   : > { %v1558_v63 = vadd.f32 %v3638_v56, %v1515_v51  ;;  %1850 = vmatmul.f32.gmra.mxu2 %v1591_v17  ;;  %v1964_v17 = vld [vmem:[#allocation6 + $0x8] sm:$0xff] }
 0x292   : > { %2013 = vmatpush.msra.mxu0 %v1964_v17 }
 0x293   : > { %v1590_v19 = vmax.f32 %v1558_v63, 0.0 }
 0x294   : > { %v1452_v27 = vpop.f32.mrf.mxu2  ;;  %v1517_v8 = vpop.f32.mrf.mxu3  ;;  %2014 = vmatpush.msra.mxu0 %v1963_v26 }
 0x295   : > { %v1453_v30 = vadd.f32 %v1452_v27, %v3563_v40  ;;  %1782 = vmatmul.f32.gmra.mxu1 %v1590_v19  ;;  %1912 = vmatmul.f32.gmra.mxu3 %v1590_v19  ;;  %v1980_v40 = vld [vmem:[#allocation6 + $0x88] sm:$0xff] }
 0x296   : > { %2078 = vmatpush.msra.mxu1 %v1980_v40 }
 0x297   : > { %v1518_v43 = vadd.f32 %v1517_v8, %v1453_v30  ;;  %v1703_v54 = vpop.f32.mrf.mxu0 }
 0x299   : > { %v1560_v14 = vadd.f32 %v3638_v56, %v1518_v43  ;;  %1853 = vmatmul.f32.gmra.mxu2 %v1593_v36 }
 0x29b   : > { %v1592_v33 = vmax.f32 %v1560_v14, 0.0 }
 0x29c   : > { %v1455_v9 = vpop.f32.mrf.mxu2  ;;  %v1520_v16 = vpop.f32.mrf.mxu3 }
 0x29d   : > { %v1456_v15 = vadd.f32 %v1455_v9, %v3584_v20  ;;  %1785 = vmatmul.f32.gmra.mxu1 %v1592_v33  ;;  %1915 = vmatmul.f32.gmra.mxu3 %v1592_v33  ;;  %v1979_v20 = vld [vmem:[#allocation6 + $0x80] sm:$0xff] }
 0x29e   : > { %2079 = vmatpush.msra.mxu1 %v1979_v20 }
 0x29f   : > { %v1521_v58 = vadd.f32 %v1520_v16, %v1456_v15  ;;  %v1706_v40 = vpop.f32.mrf.mxu0 }
 0x2a1   : > { %v1562_v4 = vadd.f32 %v3638_v56, %v1521_v58  ;;  %1856 = vmatmul.f32.gmra.mxu2 %v1595_v31 }
 0x2a3   : > { %v1594_v21 = vmax.f32 %v1562_v4, 0.0 }
 0x2a4   : > { %v1458_v36 = vpop.f32.mrf.mxu2  ;;  %v1523_v46 = vpop.f32.mrf.mxu3 }
 0x2a5   : > { %v1459_v38 = vadd.f32 %v1458_v36, %v3602_v59  ;;  %1788 = vmatmul.f32.gmra.mxu1 %v1594_v21  ;;  %1918 = vmatmul.f32.gmra.mxu3 %v1594_v21 }
 0x2a7   : > { %v1524_v35 = vadd.f32 %v1523_v46, %v1459_v38 }
 0x2a9   : > { %v1564_v24 = vadd.f32 %v3638_v56, %v1524_v35  ;;  %1859 = vmatmul.f32.gmra.mxu2 %v1597_v13 }
 0x2ab   : > { %v1596_v10 = vmax.f32 %v1564_v24, 0.0 }
 0x2ac   : > { %v1461_v31 = vpop.f32.mrf.mxu2  ;;  %v1526_v28 = vpop.f32.mrf.mxu3 }
 0x2ad   : > { %v1462_v5 = vadd.f32 %v1461_v31, %v3614_v34  ;;  %1791 = vmatmul.f32.gmra.mxu1 %v1596_v10  ;;  %1921 = vmatmul.f32.gmra.mxu3 %v1596_v10  ;;  %v1665_v34 = vld [vmem:[%s3802_s9] sm:$0x3] }
 0x2ae   : > { %v3710_v41 = vperm.slane %v1665_v34, 0  ;;  %v3713_v37 = vperm.slane %v1665_v34, 1 }
 0x2af   : > { %v1527_v59 = vadd.f32 %v1526_v28, %v1462_v5 }
 0x2b0   : > { %v1692_v6 = vadd.f32 %v1691_v22, %v3710_v41  ;;  %v1695_v63 = vadd.f32 %v1694_v44, %v3710_v41  ;;  %v1698_v53 = vadd.f32 %v1697_v48, %v3710_v41  ;;  %v1701_v36 = vadd.f32 %v1700_v39, %v3710_v41  ;;  %v1709_v22 = vpop.f32.mrf.mxu0 }
 0x2b1   : > { %v1566_v32 = vadd.f32 %v3638_v56, %v1527_v59  ;;  %1862 = vmatmul.f32.gmra.mxu2 %v1599_v1  ;;  %v1689_v1 = vadd.f32 %v1688_v49, %v3710_v41  ;;  %v1704_v28 = vadd.f32 %v1703_v54, %v3710_v41 }
 0x2b3   : > { %v1598_v57 = vmax.f32 %v1566_v32, 0.0 }
 0x2b4   : > { %v1464_v61 = vpop.f32.mrf.mxu2  ;;  %v1529_v13 = vpop.f32.mrf.mxu3 }
 0x2b5   : > { %v1465_v12 = vadd.f32 %v1464_v61, %v3626_v18  ;;  %1794 = vmatmul.f32.gmra.mxu1 %v1598_v57  ;;  %1924 = vmatmul.f32.gmra.mxu3 %v1598_v57 }
 0x2b7   : > { %v1530_v60 = vadd.f32 %v1529_v13, %v1465_v12 }
 0x2b8   : > { %v1712_v13 = vpop.f32.mrf.mxu0 }
 0x2b9   : > { %v1568_v29 = vadd.f32 %v3638_v56, %v1530_v60 }
 0x2bb   : > { %v1600_v62 = vmax.f32 %v1568_v29, 0.0  ;;  %v1707_v29 = vadd.f32 %v1706_v40, %v3710_v41 }
 0x2bc   : > { %v1818_v3 = vpop.f32.mrf.mxu2 }
 0x2bd   : > { %1797 = vmatmul.f32.gmra.mxu1 %v1600_v62  ;;  %1927 = vmatmul.f32.gmra.mxu3 %v1600_v62  ;;  %v1819_v56 = vadd.f32 %v1818_v3, %v3713_v37 }
 0x2c0   : > { %v1715_v39 = vpop.f32.mrf.mxu0 }
 0x2c2   : > { %v1753_v18 = vpop.f32.mrf.mxu1 }
 0x2c3   : > { %v1754_v11 = vadd.f32 %v1753_v18, %v1689_v1 }
 0x2c4   : > { %v1821_v23 = vpop.f32.mrf.mxu2 }
 0x2c5   : > { %v1931_v42 = vmax.f32 %v1754_v11, 0.0  ;;  %v1822_v52 = vadd.f32 %v1821_v23, %v3713_v37 }
 0x2c7   : > { %2015 = vmatmul.f32.vlgmr.msra.gmra.mxu0 %v1931_v42  ;;  %v1710_v42 = vadd.f32 %v1709_v22, %v3710_v41 }
 0x2c8   : > { %v1883_v50 = vpop.f32.mrf.mxu3  ;;  %v1718_v54 = vpop.f32.mrf.mxu0 }
 0x2c9   : > { %v1884_v47 = vadd.f32 %v1883_v50, %v1819_v56 }
 0x2ca   : > { %v1756_v45 = vpop.f32.mrf.mxu1 }
 0x2cb   : > { %v1932_v0 = vmax.f32 %v1884_v47, 0.0  ;;  %v1757_v2 = vadd.f32 %v1756_v45, %v1692_v6 }
 0x2cc   : > { %v1824_v25 = vpop.f32.mrf.mxu2 }
 0x2cd   : > { %v1933_v55 = vmax.f32 %v1757_v2, 0.0  ;;  %2080 = vmatmul.f32.vlgmr.msra.gmra.mxu1 %v1932_v0  ;;  %v1825_v14 = vadd.f32 %v1824_v25, %v3713_v37 }
 0x2cf   : > { %2018 = vmatmul.f32.gmra.mxu0 %v1933_v55  ;;  %v1713_v55 = vadd.f32 %v1712_v13, %v3710_v41 }
 0x2d0   : > { %v1886_v51 = vpop.f32.mrf.mxu3 }
 0x2d1   : > { %v1887_v19 = vadd.f32 %v1886_v51, %v1822_v52 }
 0x2d2   : > { %v1759_v7 = vpop.f32.mrf.mxu1 }
 0x2d3   : > { %v1934_v27 = vmax.f32 %v1887_v19, 0.0  ;;  %v1760_v8 = vadd.f32 %v1759_v7, %v1695_v63 }
 0x2d4   : > { %v1827_v30 = vpop.f32.mrf.mxu2 }
 0x2d5   : > { %v1935_v43 = vmax.f32 %v1760_v8, 0.0  ;;  %2083 = vmatmul.f32.gmra.mxu1 %v1934_v27  ;;  %v1828_v4 = vadd.f32 %v1827_v30, %v3713_v37 }
 0x2d7   : > { %2021 = vmatmul.f32.gmra.mxu0 %v1935_v43  ;;  %v1716_v43 = vadd.f32 %v1715_v39, %v3710_v41 }
 0x2d8   : > { %v1889_v33 = vpop.f32.mrf.mxu3 }
 0x2d9   : > { %v1890_v17 = vadd.f32 %v1889_v33, %v1825_v14 }
 0x2da   : > { %v1762_v9 = vpop.f32.mrf.mxu1 }
 0x2db   : > { %v1936_v16 = vmax.f32 %v1890_v17, 0.0  ;;  %v1763_v15 = vadd.f32 %v1762_v9, %v1698_v53 }
 0x2dc   : > { %v1830_v58 = vpop.f32.mrf.mxu2 }
 0x2dd   : > { %v1937_v49 = vmax.f32 %v1763_v15, 0.0  ;;  %2086 = vmatmul.f32.gmra.mxu1 %v1936_v16  ;;  %v1831_v10 = vadd.f32 %v1830_v58, %v3713_v37  ;;  %v1721_v15 = vpop.f32.mrf.mxu0 }
 0x2de   : > { %v1722_v22 = vadd.f32 %v1721_v15, %v3710_v41 }
 0x2df   : > { %2024 = vmatmul.f32.gmra.mxu0 %v1937_v49  ;;  %v1719_v49 = vadd.f32 %v1718_v54, %v3710_v41 }
 0x2e0   : > { %v1892_v21 = vpop.f32.mrf.mxu3 }
 0x2e1   : > { %v1893_v46 = vadd.f32 %v1892_v21, %v1828_v4 }
 0x2e2   : > { %v1765_v38 = vpop.f32.mrf.mxu1 }
 0x2e3   : > { %v1938_v26 = vmax.f32 %v1893_v46, 0.0  ;;  %v1766_v20 = vadd.f32 %v1765_v38, %v1701_v36 }
 0x2e4   : > { %v1833_v35 = vpop.f32.mrf.mxu2 }
 0x2e5   : > { %v1939_v24 = vmax.f32 %v1766_v20, 0.0  ;;  %2089 = vmatmul.f32.gmra.mxu1 %v1938_v26  ;;  %v1834_v12 = vadd.f32 %v1833_v35, %v3713_v37  ;;  %v1724_v35 = vpop.f32.mrf.mxu0 }
 0x2e7   : > { %2027 = vmatmul.f32.gmra.mxu0 %v1939_v24 }
 0x2e8   : > { %v1895_v31 = vpop.f32.mrf.mxu3 }
 0x2e9   : > { %v1896_v5 = vadd.f32 %v1895_v31, %v1831_v10 }
 0x2ea   : > { %v1768_v59 = vpop.f32.mrf.mxu1 }
 0x2eb   : > { %v1940_v32 = vmax.f32 %v1896_v5, 0.0  ;;  %v1769_v57 = vadd.f32 %v1768_v59, %v1704_v28 }
 0x2ec   : > { %v1836_v44 = vpop.f32.mrf.mxu2 }
 0x2ed   : > { %v1941_v61 = vmax.f32 %v1769_v57, 0.0  ;;  %2092 = vmatmul.f32.gmra.mxu1 %v1940_v32  ;;  %v1837_v11 = vadd.f32 %v1836_v44, %v3713_v37  ;;  %v1727_v13 = vpop.f32.mrf.mxu0 }
 0x2ef   : > { %2030 = vmatmul.f32.gmra.mxu0 %v1941_v61  ;;  %v1725_v61 = vadd.f32 %v1724_v35, %v3710_v41 }
 0x2f0   : > { %v1898_v60 = vpop.f32.mrf.mxu3 }
 0x2f1   : > { %v1899_v34 = vadd.f32 %v1898_v60, %v1834_v12 }
 0x2f2   : > { %v1771_v62 = vpop.f32.mrf.mxu1 }
 0x2f3   : > { %v1942_v3 = vmax.f32 %v1899_v34, 0.0  ;;  %v1772_v48 = vadd.f32 %v1771_v62, %v1707_v29 }
 0x2f4   : > { %v1839_v1 = vpop.f32.mrf.mxu2 }
 0x2f5   : > { %v1943_v18 = vmax.f32 %v1772_v48, 0.0  ;;  %2095 = vmatmul.f32.gmra.mxu1 %v1942_v3  ;;  %v1840_v2 = vadd.f32 %v1839_v1, %v3713_v37  ;;  %v1730_v39 = vpop.f32.mrf.mxu0 }
 0x2f7   : > { %2033 = vmatmul.f32.gmra.mxu0 %v1943_v18  ;;  %v1728_v18 = vadd.f32 %v1727_v13, %v3710_v41 }
 0x2f8   : > { %v1901_v23 = vpop.f32.mrf.mxu3 }
 0x2f9   : > { %v1902_v56 = vadd.f32 %v1901_v23, %v1837_v11 }
 0x2fa   : > { %v1774_v50 = vpop.f32.mrf.mxu1 }
 0x2fb   : > { %v1944_v6 = vmax.f32 %v1902_v56, 0.0  ;;  %v1775_v47 = vadd.f32 %v1774_v50, %v1710_v42 }
 0x2fc   : > { %v1842_v45 = vpop.f32.mrf.mxu2 }
 0x2fd   : > { %v1945_v0 = vmax.f32 %v1775_v47, 0.0  ;;  %2098 = vmatmul.f32.gmra.mxu1 %v1944_v6  ;;  %v1843_v8 = vadd.f32 %v1842_v45, %v3713_v37  ;;  %v1731_v45 = vadd.f32 %v1730_v39, %v3710_v41 }
 0x2ff   : > { %2036 = vmatmul.f32.gmra.mxu0 %v1945_v0 }
 0x300   : > { %v1904_v25 = vpop.f32.mrf.mxu3 }
 0x301   : > { %v1905_v52 = vadd.f32 %v1904_v25, %v1840_v2 }
 0x302   : > { %v1777_v51 = vpop.f32.mrf.mxu1 }
 0x303   : > { %v1946_v63 = vmax.f32 %v1905_v52, 0.0  ;;  %v1778_v19 = vadd.f32 %v1777_v51, %v1713_v55 }
 0x304   : > { %v1845_v7 = vpop.f32.mrf.mxu2 }
 0x305   : > { %v1947_v27 = vmax.f32 %v1778_v19, 0.0  ;;  %2101 = vmatmul.f32.gmra.mxu1 %v1946_v63  ;;  %v1846_v40 = vadd.f32 %v1845_v7, %v3713_v37  ;;  %v1733_v63 = vpop.f32.mrf.mxu0 }
 0x306   : > { %v1734_v7 = vadd.f32 %v1733_v63, %v3710_v41 }
 0x307   : > { %2039 = vmatmul.f32.gmra.mxu0 %v1947_v27 }
 0x308   : > { %v1907_v30 = vpop.f32.mrf.mxu3 }
 0x309   : > { %v1908_v14 = vadd.f32 %v1907_v30, %v1843_v8 }
 0x30a   : > { %v1780_v33 = vpop.f32.mrf.mxu1 }
 0x30b   : > { %v1948_v53 = vmax.f32 %v1908_v14, 0.0  ;;  %v1781_v17 = vadd.f32 %v1780_v33, %v1716_v43 }
 0x30c   : > { %v1848_v9 = vpop.f32.mrf.mxu2 }
 0x30d   : > { %v1949_v16 = vmax.f32 %v1781_v17, 0.0  ;;  %2104 = vmatmul.f32.gmra.mxu1 %v1948_v53  ;;  %v1849_v20 = vadd.f32 %v1848_v9, %v3713_v37 }
 0x30f   : > { %2042 = vmatmul.f32.gmra.mxu0 %v1949_v16 }
 0x310   : > { %v1910_v58 = vpop.f32.mrf.mxu3 }
 0x311   : > { %v1911_v4 = vadd.f32 %v1910_v58, %v1846_v40  ;;  %v3749_v40 = vld [vmem:[%s3804_s11] ss:$0 sm:$0xff] }
 0x312   : > { %v1783_v21 = vpop.f32.mrf.mxu1 }
 0x313   : > { %v1950_v36 = vmax.f32 %v1911_v4, 0.0  ;;  %v1784_v46 = vadd.f32 %v1783_v21, %v1719_v49 }
 0x314   : > { %v1851_v38 = vpop.f32.mrf.mxu2 }
 0x315   : > { %v1951_v26 = vmax.f32 %v1784_v46, 0.0  ;;  %2107 = vmatmul.f32.gmra.mxu1 %v1950_v36  ;;  %v1852_v57 = vadd.f32 %v1851_v38, %v3713_v37 }
 0x317   : > { %2045 = vmatmul.f32.gmra.mxu0 %v1951_v26 }
 0x318   : > { %v1913_v24 = vpop.f32.mrf.mxu3 }
 0x319   : > { %v1914_v10 = vadd.f32 %v1913_v24, %v1849_v20 }
 0x31a   : > { %v1786_v31 = vpop.f32.mrf.mxu1 }
 0x31b   : > { %v1952_v28 = vmax.f32 %v1914_v10, 0.0  ;;  %v1787_v5 = vadd.f32 %v1786_v31, %v1722_v22 }
 0x31c   : > { %v1854_v32 = vpop.f32.mrf.mxu2 }
 0x31d   : > { %v1953_v59 = vmax.f32 %v1787_v5, 0.0  ;;  %2110 = vmatmul.f32.gmra.mxu1 %v1952_v28  ;;  %v1855_v3 = vadd.f32 %v1854_v32, %v3713_v37 }
 0x31f   : > { %2048 = vmatmul.f32.gmra.mxu0 %v1953_v59 }
 0x320   : > { %v1916_v44 = vpop.f32.mrf.mxu3 }
 0x321   : > { %v1917_v12 = vadd.f32 %v1916_v44, %v1852_v57 }
 0x322   : > { %v1789_v60 = vpop.f32.mrf.mxu1 }
 0x323   : > { %v1954_v29 = vmax.f32 %v1917_v12, 0.0  ;;  %v1790_v34 = vadd.f32 %v1789_v60, %v1725_v61 }
 0x324   : > { %v1857_v48 = vpop.f32.mrf.mxu2 }
 0x325   : > { %v1955_v62 = vmax.f32 %v1790_v34, 0.0  ;;  %2113 = vmatmul.f32.gmra.mxu1 %v1954_v29  ;;  %v1858_v6 = vadd.f32 %v1857_v48, %v3713_v37 }
 0x327   : > { %2051 = vmatmul.f32.gmra.mxu0 %v1955_v62 }
 0x328   : > { %v1919_v1 = vpop.f32.mrf.mxu3 }
 0x329   : > { %v1920_v11 = vadd.f32 %v1919_v1, %v1855_v3 }
 0x32a   : > { %v1792_v23 = vpop.f32.mrf.mxu1 }
 0x32b   : > { %v1956_v42 = vmax.f32 %v1920_v11, 0.0  ;;  %v1793_v56 = vadd.f32 %v1792_v23, %v1728_v18 }
 0x32c   : > { %v1860_v2 = vpop.f32.mrf.mxu2 }
 0x32d   : > { %v1957_v50 = vmax.f32 %v1793_v56, 0.0  ;;  %2116 = vmatmul.f32.gmra.mxu1 %v1956_v42  ;;  %v1861_v19 = vadd.f32 %v1860_v2, %v3713_v37 }
 0x32f   : > { %2054 = vmatmul.f32.gmra.mxu0 %v1957_v50 }
 0x330   : > { %v1922_v47 = vpop.f32.mrf.mxu3 }
 0x331   : > { %v1923_v0 = vadd.f32 %v1922_v47, %v1858_v6 }
 0x332   : > { %v1795_v25 = vpop.f32.mrf.mxu1 }
 0x333   : > { %v1958_v55 = vmax.f32 %v1923_v0, 0.0  ;;  %v1796_v52 = vadd.f32 %v1795_v25, %v1731_v45 }
 0x334   : > { %v1863_v14 = vpop.f32.mrf.mxu2 }
 0x335   : > { %v1959_v51 = vmax.f32 %v1796_v52, 0.0  ;;  %2119 = vmatmul.f32.gmra.mxu1 %v1958_v55  ;;  %v1864_v53 = vadd.f32 %v1863_v14, %v3713_v37 }
 0x337   : > { %2057 = vmatmul.f32.gmra.mxu0 %v1959_v51 }
 0x338   : > { %v1925_v54 = vpop.f32.mrf.mxu3 }
 0x339   : > { %v1926_v27 = vadd.f32 %v1925_v54, %v1861_v19 }
 0x33a   : > { %v1798_v8 = vpop.f32.mrf.mxu1 }
 0x33b   : > { %v1960_v30 = vmax.f32 %v1926_v27, 0.0  ;;  %v1799_v43 = vadd.f32 %v1798_v8, %v1734_v7 }
 0x33d   : > { %v1961_v33 = vmax.f32 %v1799_v43, 0.0  ;;  %2122 = vmatmul.f32.gmra.mxu1 %v1960_v30 }
 0x33f   : > { %2060 = vmatmul.f32.gmra.mxu0 %v1961_v33 }
 0x340   : > { %v1928_v17 = vpop.f32.mrf.mxu3 }
 0x341   : > { %v1929_v9 = vadd.f32 %v1928_v17, %v1864_v53 }
 0x343   : > { %v1962_v16 = vmax.f32 %v1929_v9, 0.0 }
 0x344   : > { %v2016_v15 = vpop.f32.mrf.mxu0 }
 0x345   : > { %2125 = vmatmul.f32.gmra.mxu1 %v1962_v16  ;;  %v2017_v41 = vadd.f32 %v3749_v40, %v2016_v15 }
 0x34a   : > { %v2081_v37 = vpop.f32.mrf.mxu1 }
 0x34b   : > { %v2082_v58 = vadd.f32 %v2081_v37, %v2017_v41 }
 0x34c   : > { %v2019_v49 = vpop.f32.mrf.mxu0 }
 0x34d   : > { %2129 = vst [vmem:[%s3757_s14] sm:$0xff] %v2082_v58  ;;  %v2020_v4 = vadd.f32 %v3749_v40, %v2019_v49 }
 0x352   : > { %v2084_v21 = vpop.f32.mrf.mxu1 }
 0x353   : > { %v2085_v36 = vadd.f32 %v2084_v21, %v2020_v4 }
 0x354   : > { %v2022_v46 = vpop.f32.mrf.mxu0 }
 0x355   : > { %2130 = vst [vmem:[%s3757_s14 + $0x8] sm:$0xff] %v2085_v36  ;;  %v2023_v38 = vadd.f32 %v3749_v40, %v2022_v46 }
 0x35a   : > { %v2087_v26 = vpop.f32.mrf.mxu1 }
 0x35b   : > { %v2088_v20 = vadd.f32 %v2087_v26, %v2023_v38 }
 0x35c   : > { %v2025_v35 = vpop.f32.mrf.mxu0 }
 0x35d   : > { %2131 = vst [vmem:[%s3757_s14 + $0x10] sm:$0xff] %v2088_v20  ;;  %v2026_v24 = vadd.f32 %v3749_v40, %v2025_v35 }
 0x362   : > { %v2090_v22 = vpop.f32.mrf.mxu1 }
 0x363   : > { %v2091_v10 = vadd.f32 %v2090_v22, %v2026_v24 }
 0x364   : > { %v2028_v31 = vpop.f32.mrf.mxu0 }
 0x365   : > { %2132 = vst [vmem:[%s3757_s14 + $0x18] sm:$0xff] %v2091_v10  ;;  %v2029_v28 = vadd.f32 %v3749_v40, %v2028_v31 }
 0x36a   : > { %v2093_v5 = vpop.f32.mrf.mxu1 }
 0x36b   : > { %v2094_v59 = vadd.f32 %v2093_v5, %v2029_v28 }
 0x36c   : > { %v2031_v32 = vpop.f32.mrf.mxu0 }
 0x36d   : > { %2133 = vst [vmem:[%s3757_s14 + $0x20] sm:$0xff] %v2094_v59  ;;  %v2032_v57 = vadd.f32 %v3749_v40, %v2031_v32 }
 0x372   : > { %v2096_v44 = vpop.f32.mrf.mxu1 }
 0x373   : > { %v2097_v61 = vadd.f32 %v2096_v44, %v2032_v57 }
 0x374   : > { %v2034_v12 = vpop.f32.mrf.mxu0 }
 0x375   : > { %2134 = vst [vmem:[%s3757_s14 + $0x28] sm:$0xff] %v2097_v61  ;;  %v2035_v13 = vadd.f32 %v3749_v40, %v2034_v12 }
 0x37a   : > { %v2099_v60 = vpop.f32.mrf.mxu1 }
 0x37b   : > { %v2100_v29 = vadd.f32 %v2099_v60, %v2035_v13 }
 0x37c   : > { %v2037_v34 = vpop.f32.mrf.mxu0 }
 0x37d   : > { %2135 = vst [vmem:[%s3757_s14 + $0x30] sm:$0xff] %v2100_v29  ;;  %v2038_v62 = vadd.f32 %v3749_v40, %v2037_v34 }
 0x382   : > { %v2102_v3 = vpop.f32.mrf.mxu1 }
 0x383   : > { %v2103_v48 = vadd.f32 %v2102_v3, %v2038_v62 }
 0x384   : > { %v2040_v1 = vpop.f32.mrf.mxu0 }
 0x385   : > { %2136 = vst [vmem:[%s3757_s14 + $0x38] sm:$0xff] %v2103_v48  ;;  %v2041_v18 = vadd.f32 %v3749_v40, %v2040_v1 }
 0x38a   : > { %v2105_v11 = vpop.f32.mrf.mxu1 }
 0x38b   : > { %v2106_v23 = vadd.f32 %v2105_v11, %v2041_v18 }
 0x38c   : > { %v2043_v42 = vpop.f32.mrf.mxu0 }
 0x38d   : > { %2137 = vst [vmem:[%s3757_s14 + $0x40] sm:$0xff] %v2106_v23  ;;  %v2044_v56 = vadd.f32 %v3749_v40, %v2043_v42 }
 0x392   : > { %v2108_v39 = vpop.f32.mrf.mxu1 }
 0x393   : > { %v2109_v50 = vadd.f32 %v2108_v39, %v2044_v56 }
 0x394   : > { %v2046_v6 = vpop.f32.mrf.mxu0 }
 0x395   : > { %2138 = vst [vmem:[%s3757_s14 + $0x48] sm:$0xff] %v2109_v50  ;;  %v2047_v47 = vadd.f32 %v3749_v40, %v2046_v6 }
 0x39a   : > { %v2111_v45 = vpop.f32.mrf.mxu1 }
 0x39b   : > { %v2112_v0 = vadd.f32 %v2111_v45, %v2047_v47 }
 0x39c   : > { %v2049_v2 = vpop.f32.mrf.mxu0 }
 0x39d   : > { %2139 = vst [vmem:[%s3757_s14 + $0x50] sm:$0xff] %v2112_v0  ;;  %v2050_v25 = vadd.f32 %v3749_v40, %v2049_v2 }
 0x3a2   : > { %v2114_v55 = vpop.f32.mrf.mxu1 }
 0x3a3   : > { %v2115_v52 = vadd.f32 %v2114_v55, %v2050_v25 }
 0x3a4   : > { %v2052_v51 = vpop.f32.mrf.mxu0 }
 0x3a5   : > { %2140 = vst [vmem:[%s3757_s14 + $0x58] sm:$0xff] %v2115_v52  ;;  %v2053_v63 = vadd.f32 %v3749_v40, %v2052_v51 }
 0x3aa   : > { %v2117_v19 = vpop.f32.mrf.mxu1 }
 0x3ab   : > { %v2118_v54 = vadd.f32 %v2117_v19, %v2053_v63 }
 0x3ac   : > { %v2055_v7 = vpop.f32.mrf.mxu0 }
 0x3ad   : > { %2141 = vst [vmem:[%s3757_s14 + $0x60] sm:$0xff] %v2118_v54  ;;  %v2056_v27 = vadd.f32 %v3749_v40, %v2055_v7 }
 0x3b2   : > { %v2120_v8 = vpop.f32.mrf.mxu1 }
 0x3b3   : > { %v2121_v30 = vadd.f32 %v2120_v8, %v2056_v27 }
 0x3b4   : > { %v2058_v43 = vpop.f32.mrf.mxu0 }
 0x3b5   : > { %2142 = vst [vmem:[%s3757_s14 + $0x68] sm:$0xff] %v2121_v30  ;;  %v2059_v14 = vadd.f32 %v3749_v40, %v2058_v43 }
 0x3ba   : > { %v2123_v33 = vpop.f32.mrf.mxu1 }
 0x3bb   : > { %v2124_v53 = vadd.f32 %v2123_v33, %v2059_v14 }
 0x3bc   : > { %v2061_v17 = vpop.f32.mrf.mxu0 }
 0x3bd   : > { %2143 = vst [vmem:[%s3757_s14 + $0x70] sm:$0xff] %v2124_v53  ;;  %v2062_v9 = vadd.f32 %v3749_v40, %v2061_v17 }
 0x3c2   : > { %v2126_v16 = vpop.f32.mrf.mxu1 }
 0x3c3   : > { %v2127_v15 = vadd.f32 %v2126_v16, %v2062_v9 }
 0x3c5   : > { %2144 = vst [vmem:[%s3757_s14 + $0x78] sm:$0xff] %v2127_v15 }
 0x3c6 PF: > { %s24_s21 = sadd.s32 1, %s2442_s21  }
 0x3c7   : > { %p21_p7 = scmp.ge.s32.totalorder %s24_s21, 6  }
 0x3c9   :  { %23 = sbr.rel (!%p21_p7) target bundleno = 2 (0x2), region = 111 }
 0x3ce   :  { %2167 = vsyncpa [#allocation3], 1 }
 0x3cf   :  { %2169 = vsyncpa [#allocation3 + $0x1], 1 }
 0x3d0   :  { %2170 = vsyncpa [#allocation5], 1 }

</bundles_post_ra>
